<compile_context>
chip_gen: v5e
topology: v5e:2x2
jax: 0.10.0
libtpu: 0.0.40
codegen_flags: <defaults>
</compile_context>

<pallas_src>
import math

import jax
import jax.numpy as jnp
from jax import lax
from jax.experimental import pallas as pl
from jax.experimental.pallas import tpu as pltpu

# ------------------------------------------------------------------ config ----
VOCAB_SIZE      = 64
PAD_IDX         = 0
EMB_DIM         = 32     # STEncoder token-embedding dim
RNN_HIDDEN      = 32     # config.rnn.hidden_size
HIDDEN          = 32     # config.hidden_size
EDGE_DIM        = 4      # config.edge_dim
POOL_RATIO      = 0.5    # config.pooling_ratio
N_HIDDEN_LAYERS = 2      # config.n_hidden_layers  -> hidden loop runs once

NUM_GRAPHS      = 2
G_PAD           = 8      # graph axis padded to a full sublane set inside kernels
NODES_PER_GRAPH = 8
TOKENS_PER_NODE = 8

_NEG_INF = -1e30


# --------------------------------------------------------------- pallas glue --
def _vmem_spec():
    # Whole array resident in VMEM, no grid / no pipelining machinery.
    return pl.BlockSpec(memory_space=pltpu.MemorySpace.VMEM)


def _mxu_dot(a, b):
    """bf16-in / f32-accumulate matmul (MXU friendly on v5e/v6e/v7x)."""
    return jnp.dot(a.astype(jnp.bfloat16), b.astype(jnp.bfloat16),
                   preferred_element_type=jnp.float32)


# ----------------------------------------------------------- kernel sub-bodies
def _gine_body(x, src_ref, dst_ref, valid_ref, ea_ref,
               we_ref, be_ref, w1_ref, b1_ref, w2_ref, b2_ref,
               wp_ref, packed_ref):
    """GINEConv (eps=0) + outer ReLU + TopKPooling score; packs [out | score]."""
    n, h = x.shape
    e = ea_ref.shape[0]

    # One-hot gather/scatter masks built in-kernel (iota + compare on the VPU):
    #   gsrc[e, n] = (src[e] == n)           -> gather x[src]
    #   scat[n, e] = (dst[e] == n) * valid   -> scatter-sum messages to dst
    gsrc = (lax.broadcasted_iota(jnp.int32, (e, n), 1) == src_ref[...]
            ).astype(jnp.float32)                                      # [E, N]
    scat = (lax.broadcasted_iota(jnp.int32, (n, e), 0) == dst_ref[...]
            ).astype(jnp.float32) * valid_ref[...]                     # [N, E]

    x_src = _mxu_dot(gsrc, x)                                          # [E, H]
    e_emb = _mxu_dot(ea_ref[...], we_ref[...]) + be_ref[...]           # [E, H]
    msg = jnp.maximum(x_src + e_emb, 0.0)                              # [E, H]
    agg = _mxu_dot(scat, msg)                                          # [N, H]

    hsum = x + agg                                                     # (1+eps)x, eps=0
    h1 = jnp.maximum(_mxu_dot(hsum, w1_ref[...]) + b1_ref[...], 0.0)
    h2 = _mxu_dot(h1, w2_ref[...]) + b2_ref[...]
    out = jnp.maximum(h2, 0.0)                                         # outer F.relu
    score = jnp.tanh(_mxu_dot(out, wp_ref[...]))                       # [N, 1]

    # Lane-dense packed store: one [N, 2H] write instead of [N,H] + [N,1].
    packed_ref[...] = jnp.concatenate(
        [out, jnp.broadcast_to(score, (n, h))], axis=1)


def _attention_pool(x, batch_ref, wg_ref, bg_ref):
    """GlobalAttention: per-graph softmax of gate_nn(x), weighted node sum."""
    n = x.shape[0]
    gate = _mxu_dot(x, wg_ref[...]) + bg_ref[...]                      # [N, 1]
    bmask = (lax.broadcasted_iota(jnp.int32, (n, G_PAD), 1) == batch_ref[...]
             ).astype(jnp.float32)                                     # [N, G_PAD]
    gate_bc = jnp.broadcast_to(gate, bmask.shape)
    masked = jnp.where(bmask > 0.0, gate_bc, jnp.full_like(bmask, _NEG_INF))
    m = jnp.max(masked, axis=0, keepdims=True)                         # [1, G_PAD]
    e = jnp.exp(masked - m) * bmask                                    # [N, G_PAD]
    denom = jnp.sum(e, axis=0, keepdims=True)
    denom = jnp.where(denom > 0.0, denom, 1.0)       # guard empty (padded) graphs
    p = e * pl.reciprocal(denom, approx=True)                          # [N, G_PAD]
    # pooled[g, h] = sum_n p[n, g] * x[n, h]
    return lax.dot_general(p.astype(jnp.bfloat16), x.astype(jnp.bfloat16),
                           (((0,), (0,)), ((), ())),
                           preferred_element_type=jnp.float32)         # [G_PAD, H]


# -------------------------------------------------------------------- kernels -
def _encode_layer_kernel(emb_ref, cnt_ref, wst_ref, bst_ref,
                         src_ref, dst_ref, valid_ref, ea_ref,
                         we_ref, be_ref, w1_ref, b1_ref, w2_ref, b2_ref,
                         wp_ref, packed_ref):
    """Fused STEncoder summary + input_GCL + ReLU + input_GPL score."""
    # TODO(synk): the reference STEncoder runs an RNN over token embeddings;
    # a masked token mean + linear projection is used as the summary here.
    summed = jnp.sum(emb_ref[...], axis=1)                             # [N, De]
    mean = summed * pl.reciprocal(cnt_ref[...], approx=True)           # [N, De]
    x = _mxu_dot(mean, wst_ref[...]) + bst_ref[...]                    # [N, H]
    _gine_body(x, src_ref, dst_ref, valid_ref, ea_ref,
               we_ref, be_ref, w1_ref, b1_ref, w2_ref, b2_ref,
               wp_ref, packed_ref)


def _attpool_layer_kernel(x_ref, batch_ref, wg_ref, bg_ref, prev_ref,
                          src_ref, dst_ref, valid_ref, ea_ref,
                          we_ref, be_ref, w1_ref, b1_ref, w2_ref, b2_ref,
                          wp_ref, pooled_ref, packed_ref):
    """Fused GlobalAttention pooling of x + next GINE layer + TopK score."""
    x = x_ref[...]
    pooled_ref[...] = prev_ref[...] + _attention_pool(x, batch_ref, wg_ref, bg_ref)
    _gine_body(x, src_ref, dst_ref, valid_ref, ea_ref,
               we_ref, be_ref, w1_ref, b1_ref, w2_ref, b2_ref,
               wp_ref, packed_ref)


def _attpool_kernel(x_ref, batch_ref, wg_ref, bg_ref, prev_ref, pooled_ref):
    """Final GlobalAttention pooling, accumulated into the running output."""
    pooled_ref[...] = prev_ref[...] + _attention_pool(
        x_ref[...], batch_ref, wg_ref, bg_ref)


# --------------------------------------------------------------- kernel wraps -
def _run_encode_layer(emb3, cnt, src_c, dst_r, valid_r, edge_attr, wp, p):
    n = emb3.shape[0]
    inputs = (emb3, cnt, p['W_st'], p['b_st'],
              src_c, dst_r, valid_r, edge_attr,
              p['W_e'], p['b_e'], p['W1'], p['b1'], p['W2'], p['b2'], wp)
    packed = pl.pallas_call(
        _encode_layer_kernel,
        out_shape=jax.ShapeDtypeStruct((n, 2 * HIDDEN), jnp.float32),
        in_specs=[_vmem_spec() for _ in inputs],
        out_specs=_vmem_spec(),
    )(*inputs)
    return packed[:, :HIDDEN], packed[:, HIDDEN:HIDDEN + 1]


def _run_attpool_layer(x, batch_c, prev, src_c, dst_r, valid_r, edge_attr, wp, p):
    n = x.shape[0]
    inputs = (x, batch_c, p['Wg'], p['bg'], prev,
              src_c, dst_r, valid_r, edge_attr,
              p['W_e'], p['b_e'], p['W1'], p['b1'], p['W2'], p['b2'], wp)
    pooled, packed = pl.pallas_call(
        _attpool_layer_kernel,
        out_shape=(jax.ShapeDtypeStruct((G_PAD, HIDDEN), jnp.float32),
                   jax.ShapeDtypeStruct((n, 2 * HIDDEN), jnp.float32)),
        in_specs=[_vmem_spec() for _ in inputs],
        out_specs=(_vmem_spec(), _vmem_spec()),
    )(*inputs)
    return pooled, packed[:, :HIDDEN], packed[:, HIDDEN:HIDDEN + 1]


def _run_attpool(x, batch_c, prev, p):
    inputs = (x, batch_c, p['Wg'], p['bg'], prev)
    return pl.pallas_call(
        _attpool_kernel,
        out_shape=jax.ShapeDtypeStruct((G_PAD, HIDDEN), jnp.float32),
        in_specs=[_vmem_spec() for _ in inputs],
        out_specs=_vmem_spec(),
    )(*inputs)


# ------------------------------------------------------------------ JAX glue --
def _per_graph_topk(score, num_graphs, nodes_per_graph, k):
    s = score.reshape(num_graphs, nodes_per_graph)
    _, idx = jax.lax.top_k(s, k)                                       # per graph
    perm = (idx + jnp.arange(num_graphs)[:, None] * nodes_per_graph).reshape(-1)
    return perm


def _relabel_subgraph(perm, src, dst, valid, num_old_nodes):
    new_id = jnp.full((num_old_nodes,), -1, jnp.int32)
    new_id = new_id.at[perm].set(jnp.arange(perm.shape[0], dtype=jnp.int32))
    src_new_id = new_id[src]
    dst_new_id = new_id[dst]
    keep = (valid * (src_new_id >= 0).astype(jnp.float32)
            * (dst_new_id >= 0).astype(jnp.float32))
    new_src = jnp.where(src_new_id >= 0, src_new_id, 0)
    new_dst = jnp.where(dst_new_id >= 0, dst_new_id, 0)
    return new_src, new_dst, keep


# ----------------------------------------------------------------- parameters -
def init_params(key):
    ks = jax.random.split(key, 12)

    def lin(k, fan_in, fan_out):
        return jax.random.normal(k, (fan_in, fan_out), jnp.float32) / math.sqrt(fan_in)

    p = {}
    emb = jax.random.normal(ks[0], (VOCAB_SIZE, EMB_DIM), jnp.float32) * 0.1
    p['embedding'] = emb.at[PAD_IDX].set(0.0)
    p['W_st'] = lin(ks[1], EMB_DIM, RNN_HIDDEN)
    p['b_st'] = jnp.zeros((1, RNN_HIDDEN), jnp.float32)
    # GINEConv edge Linear(edge_dim -> rnn.hidden_size)
    p['W_e'] = lin(ks[2], EDGE_DIM, RNN_HIDDEN)
    p['b_e'] = jnp.zeros((1, RNN_HIDDEN), jnp.float32)
    # GINEConv nn: Linear(rnn.hidden, hidden) -> ReLU -> Linear(hidden, hidden)
    p['W1'] = lin(ks[3], RNN_HIDDEN, HIDDEN)
    p['b1'] = jnp.zeros((1, HIDDEN), jnp.float32)
    p['W2'] = lin(ks[4], HIDDEN, HIDDEN)
    p['b2'] = jnp.zeros((1, HIDDEN), jnp.float32)
    # TopKPooling weights (pre-normalized: score = tanh(x @ w / ||w||))
    wp_in = jax.random.normal(ks[5], (HIDDEN,), jnp.float32)
    p['wp_input'] = (wp_in / jnp.linalg.norm(wp_in))[:, None]
    for i in range(N_HIDDEN_LAYERS - 1):
        wp_h = jax.random.normal(ks[6 + i], (HIDDEN,), jnp.float32)
        p[f'wp_hidden{i}'] = (wp_h / jnp.linalg.norm(wp_h))[:, None]
    # GlobalAttention gate: Linear(hidden, 1)
    p['Wg'] = lin(ks[10], HIDDEN, 1)
    p['bg'] = jnp.zeros((1, 1), jnp.float32)
    return p


# ------------------------------------------------------------------- forward --
def gine_conv_encoder_forward(tokens, src, dst, edge_attr, batch, params):
    n0 = tokens.shape[0]

    # STEncoder inputs (embedding gather + mask stay in XLA, O(N*T*De)).
    mask = (tokens != PAD_IDX).astype(jnp.float32)                     # [N, T]
    emb3 = params['embedding'][tokens] * mask[:, :, None]              # [N, T, De]
    cnt = jnp.maximum(mask.sum(axis=1, keepdims=True), 1.0)            # [N, 1]

    valid = jnp.ones((src.shape[0],), jnp.float32)

    # ---- fused: STEncoder summary + input_GCL + ReLU + input_GPL score ----
    x1, score1 = _run_encode_layer(
        emb3, cnt, src[:, None], dst[None, :], valid[None, :],
        edge_attr, params['wp_input'], params)

    # ---- TopK pooling 1 + subgraph relabel (data-dependent, JAX glue) ----
    nodes_per_graph, n_cur = NODES_PER_GRAPH, n0
    k = math.ceil(POOL_RATIO * nodes_per_graph)
    perm = _per_graph_topk(score1[:, 0], NUM_GRAPHS, nodes_per_graph, k)
    x_cur = x1[perm] * score1[perm]                                    # TopK multiplier
    batch_cur = batch[perm]
    src, dst, valid = _relabel_subgraph(perm, src, dst, valid, n_cur)
    nodes_per_graph, n_cur = k, NUM_GRAPHS * k

    out = jnp.zeros((G_PAD, HIDDEN), jnp.float32)

    # ---- hidden loop: fused [attpool of x_cur] + [GINE layer + score] ----
    # (forward reuses input_GCL weights inside the loop, as in the reference)
    for i in range(N_HIDDEN_LAYERS - 1):
        out, x_next, score = _run_attpool_layer(
            x_cur, batch_cur[:, None], out,
            src[:, None], dst[None, :], valid[None, :],
            edge_attr, params[f'wp_hidden{i}'], params)

        k = math.ceil(POOL_RATIO * nodes_per_graph)
        perm = _per_graph_topk(score[:, 0], NUM_GRAPHS, nodes_per_graph, k)
        x_cur = x_next[perm] * score[perm]
        batch_cur = batch_cur[perm]
        src, dst, valid = _relabel_subgraph(perm, src, dst, valid, n_cur)
        nodes_per_graph, n_cur = k, NUM_GRAPHS * k

    # ---- final attention pooling of the last subgraph + accumulate ----
    out = _run_attpool(x_cur, batch_cur[:, None], out, params)
    return out[:NUM_GRAPHS]                                            # [G, HIDDEN]


# ---------------------------------------------------------------------- main --
if __name__ == "__main__":
    key = jax.random.PRNGKey(0)
    k_tok, k_edge, k_par = jax.random.split(key, 3)

    n0 = NUM_GRAPHS * NODES_PER_GRAPH

    # Node token ids (some padding on even rows; column 0 always non-pad).
    tokens = jax.random.randint(k_tok, (n0, TOKENS_PER_NODE), 1, VOCAB_SIZE, jnp.int32)
    tokens = tokens.at[::2, 6:].set(PAD_IDX)

    # Bidirectional ring edges inside each graph.
    src_list, dst_list = [], []
    for g in range(NUM_GRAPHS):
        off = g * NODES_PER_GRAPH
        a = jnp.arange(NODES_PER_GRAPH, dtype=jnp.int32) + off
        b = (jnp.arange(NODES_PER_GRAPH, dtype=jnp.int32) + 1) % NODES_PER_GRAPH + off
        src_list += [a, b]
        dst_list += [b, a]
    src = jnp.concatenate(src_list)
    dst = jnp.concatenate(dst_list)
    num_edges = src.shape[0]

    edge_attr = jax.random.normal(k_edge, (num_edges, EDGE_DIM), jnp.float32)
    batch = jnp.repeat(jnp.arange(NUM_GRAPHS, dtype=jnp.int32), NODES_PER_GRAPH)

    params = init_params(k_par)

    fwd = jax.jit(gine_conv_encoder_forward)
    out = fwd(tokens, src, dst, edge_attr, batch, params)
    out = jax.block_until_ready(out)
    assert out.shape == (NUM_GRAPHS, HIDDEN)
    assert bool(jnp.all(jnp.isfinite(out)))
    print("KERNEL_OK")
</pallas_src>

<mosaic_0001>
module attributes {stable_mosaic.version = 11 : i64} {
  func.func @_encode_layer_kernel(%arg0: memref<16x8x32xf32, #tpu.memory_space<vmem>>, %arg1: memref<16x1xf32, #tpu.memory_space<vmem>>, %arg2: memref<32x32xf32, #tpu.memory_space<vmem>>, %arg3: memref<1x32xf32, #tpu.memory_space<vmem>>, %arg4: memref<32x1xi32, #tpu.memory_space<vmem>>, %arg5: memref<1x32xi32, #tpu.memory_space<vmem>>, %arg6: memref<1x32xf32, #tpu.memory_space<vmem>>, %arg7: memref<32x4xf32, #tpu.memory_space<vmem>>, %arg8: memref<4x32xf32, #tpu.memory_space<vmem>>, %arg9: memref<1x32xf32, #tpu.memory_space<vmem>>, %arg10: memref<32x32xf32, #tpu.memory_space<vmem>>, %arg11: memref<1x32xf32, #tpu.memory_space<vmem>>, %arg12: memref<32x32xf32, #tpu.memory_space<vmem>>, %arg13: memref<1x32xf32, #tpu.memory_space<vmem>>, %arg14: memref<32x1xf32, #tpu.memory_space<vmem>>, %arg15: memref<16x64xf32, #tpu.memory_space<vmem>>) attributes {dimension_semantics = [], scalar_prefetch = 0 : i64, scratch_operands = 0 : i64, tpu.core_type = #tpu.core_type<tc>} {
    %c0 = arith.constant 0 : index
    %c0_0 = arith.constant 0 : index
    %c0_1 = arith.constant 0 : index
    %0 = vector.load %arg0[%c0, %c0_0, %c0_1] : memref<16x8x32xf32, #tpu.memory_space<vmem>>, vector<16x8x32xf32>
    %cst = arith.constant dense<0.000000e+00> : vector<16x32xf32>
    %1 = vector.multi_reduction <add>, %0, %cst [1] : vector<16x8x32xf32> to vector<16x32xf32>
    %c0_2 = arith.constant 0 : index
    %c0_3 = arith.constant 0 : index
    %2 = vector.load %arg1[%c0_2, %c0_3] : memref<16x1xf32, #tpu.memory_space<vmem>>, vector<16x1xf32>
    %3 = tpu.reciprocal %2 {approx = true} : vector<16x1xf32> -> vector<16x1xf32>
    %4 = vector.broadcast %3 : vector<16x1xf32> to vector<16x32xf32>
    %5 = arith.mulf %1, %4 : vector<16x32xf32>
    %c0_4 = arith.constant 0 : index
    %c0_5 = arith.constant 0 : index
    %6 = vector.load %arg2[%c0_4, %c0_5] : memref<32x32xf32, #tpu.memory_space<vmem>>, vector<32x32xf32>
    %7 = arith.truncf %5 : vector<16x32xf32> to vector<16x32xbf16>
    %8 = arith.truncf %6 : vector<32x32xf32> to vector<32x32xbf16>
    %cst_6 = arith.constant dense<0.000000e+00> : vector<16x32xf32>
    %9 = tpu.matmul %7, %8, %cst_6 {dimension_numbers = #tpu.dot_dimension_numbers<[1], [0], [0], [1], [0, 0, 1, 1], [], []>} : vector<16x32xbf16>, vector<32x32xbf16>, vector<16x32xf32> -> vector<16x32xf32>
    %c0_7 = arith.constant 0 : index
    %c0_8 = arith.constant 0 : index
    %10 = vector.load %arg3[%c0_7, %c0_8] : memref<1x32xf32, #tpu.memory_space<vmem>>, vector<1x32xf32>
    %11 = vector.broadcast %10 : vector<1x32xf32> to vector<16x32xf32>
    %12 = arith.addf %9, %11 : vector<16x32xf32>
    %13 = tpu.iota {dimensions = array<i32: 1>} : vector<32x16xi32>
    %c0_9 = arith.constant 0 : index
    %c0_10 = arith.constant 0 : index
    %14 = vector.load %arg4[%c0_9, %c0_10] : memref<32x1xi32, #tpu.memory_space<vmem>>, vector<32x1xi32>
    %15 = vector.broadcast %14 : vector<32x1xi32> to vector<32x16xi32>
    %16 = arith.cmpi eq, %13, %15 : vector<32x16xi32>
    %17 = arith.extui %16 : vector<32x16xi1> to vector<32x16xi32>
    %18 = arith.sitofp %17 : vector<32x16xi32> to vector<32x16xf32>
    %19 = tpu.iota {dimensions = array<i32: 0>} : vector<16x32xi32>
    %c0_11 = arith.constant 0 : index
    %c0_12 = arith.constant 0 : index
    %20 = vector.load %arg5[%c0_11, %c0_12] : memref<1x32xi32, #tpu.memory_space<vmem>>, vector<1x32xi32>
    %21 = vector.broadcast %20 : vector<1x32xi32> to vector<16x32xi32>
    %22 = arith.cmpi eq, %19, %21 : vector<16x32xi32>
    %23 = arith.extui %22 : vector<16x32xi1> to vector<16x32xi32>
    %24 = arith.sitofp %23 : vector<16x32xi32> to vector<16x32xf32>
    %c0_13 = arith.constant 0 : index
    %c0_14 = arith.constant 0 : index
    %25 = vector.load %arg6[%c0_13, %c0_14] : memref<1x32xf32, #tpu.memory_space<vmem>>, vector<1x32xf32>
    %26 = vector.broadcast %25 : vector<1x32xf32> to vector<16x32xf32>
    %27 = arith.mulf %24, %26 : vector<16x32xf32>
    %28 = arith.truncf %18 : vector<32x16xf32> to vector<32x16xbf16>
    %29 = arith.truncf %12 : vector<16x32xf32> to vector<16x32xbf16>
    %cst_15 = arith.constant dense<0.000000e+00> : vector<32x32xf32>
    %30 = tpu.matmul %28, %29, %cst_15 {dimension_numbers = #tpu.dot_dimension_numbers<[1], [0], [0], [1], [0, 0, 1, 1], [], []>} : vector<32x16xbf16>, vector<16x32xbf16>, vector<32x32xf32> -> vector<32x32xf32>
    %c0_16 = arith.constant 0 : index
    %c0_17 = arith.constant 0 : index
    %31 = vector.load %arg7[%c0_16, %c0_17] : memref<32x4xf32, #tpu.memory_space<vmem>>, vector<32x4xf32>
    %c0_18 = arith.constant 0 : index
    %c0_19 = arith.constant 0 : index
    %32 = vector.load %arg8[%c0_18, %c0_19] : memref<4x32xf32, #tpu.memory_space<vmem>>, vector<4x32xf32>
    %33 = arith.truncf %31 : vector<32x4xf32> to vector<32x4xbf16>
    %34 = arith.truncf %32 : vector<4x32xf32> to vector<4x32xbf16>
    %cst_20 = arith.constant dense<0.000000e+00> : vector<32x32xf32>
    %35 = tpu.matmul %33, %34, %cst_20 {dimension_numbers = #tpu.dot_dimension_numbers<[1], [0], [0], [1], [0, 0, 1, 1], [], []>} : vector<32x4xbf16>, vector<4x32xbf16>, vector<32x32xf32> -> vector<32x32xf32>
    %c0_21 = arith.constant 0 : index
    %c0_22 = arith.constant 0 : index
    %36 = vector.load %arg9[%c0_21, %c0_22] : memref<1x32xf32, #tpu.memory_space<vmem>>, vector<1x32xf32>
    %37 = vector.broadcast %36 : vector<1x32xf32> to vector<32x32xf32>
    %38 = arith.addf %35, %37 : vector<32x32xf32>
    %39 = arith.addf %30, %38 : vector<32x32xf32>
    %cst_23 = arith.constant 0.000000e+00 : f32
    %40 = vector.broadcast %cst_23 : f32 to vector<32x32xf32>
    %41 = arith.maximumf %39, %40 : vector<32x32xf32>
    %42 = arith.truncf %27 : vector<16x32xf32> to vector<16x32xbf16>
    %43 = arith.truncf %41 : vector<32x32xf32> to vector<32x32xbf16>
    %cst_24 = arith.constant dense<0.000000e+00> : vector<16x32xf32>
    %44 = tpu.matmul %42, %43, %cst_24 {dimension_numbers = #tpu.dot_dimension_numbers<[1], [0], [0], [1], [0, 0, 1, 1], [], []>} : vector<16x32xbf16>, vector<32x32xbf16>, vector<16x32xf32> -> vector<16x32xf32>
    %45 = arith.addf %12, %44 : vector<16x32xf32>
    %c0_25 = arith.constant 0 : index
    %c0_26 = arith.constant 0 : index
    %46 = vector.load %arg10[%c0_25, %c0_26] : memref<32x32xf32, #tpu.memory_space<vmem>>, vector<32x32xf32>
    %47 = arith.truncf %45 : vector<16x32xf32> to vector<16x32xbf16>
    %48 = arith.truncf %46 : vector<32x32xf32> to vector<32x32xbf16>
    %cst_27 = arith.constant dense<0.000000e+00> : vector<16x32xf32>
    %49 = tpu.matmul %47, %48, %cst_27 {dimension_numbers = #tpu.dot_dimension_numbers<[1], [0], [0], [1], [0, 0, 1, 1], [], []>} : vector<16x32xbf16>, vector<32x32xbf16>, vector<16x32xf32> -> vector<16x32xf32>
    %c0_28 = arith.constant 0 : index
    %c0_29 = arith.constant 0 : index
    %50 = vector.load %arg11[%c0_28, %c0_29] : memref<1x32xf32, #tpu.memory_space<vmem>>, vector<1x32xf32>
    %51 = vector.broadcast %50 : vector<1x32xf32> to vector<16x32xf32>
    %52 = arith.addf %49, %51 : vector<16x32xf32>
    %cst_30 = arith.constant 0.000000e+00 : f32
    %53 = vector.broadcast %cst_30 : f32 to vector<16x32xf32>
    %54 = arith.maximumf %52, %53 : vector<16x32xf32>
    %c0_31 = arith.constant 0 : index
    %c0_32 = arith.constant 0 : index
    %55 = vector.load %arg12[%c0_31, %c0_32] : memref<32x32xf32, #tpu.memory_space<vmem>>, vector<32x32xf32>
    %56 = arith.truncf %54 : vector<16x32xf32> to vector<16x32xbf16>
    %57 = arith.truncf %55 : vector<32x32xf32> to vector<32x32xbf16>
    %cst_33 = arith.constant dense<0.000000e+00> : vector<16x32xf32>
    %58 = tpu.matmul %56, %57, %cst_33 {dimension_numbers = #tpu.dot_dimension_numbers<[1], [0], [0], [1], [0, 0, 1, 1], [], []>} : vector<16x32xbf16>, vector<32x32xbf16>, vector<16x32xf32> -> vector<16x32xf32>
    %c0_34 = arith.constant 0 : index
    %c0_35 = arith.constant 0 : index
    %59 = vector.load %arg13[%c0_34, %c0_35] : memref<1x32xf32, #tpu.memory_space<vmem>>, vector<1x32xf32>
    %60 = vector.broadcast %59 : vector<1x32xf32> to vector<16x32xf32>
    %61 = arith.addf %58, %60 : vector<16x32xf32>
    %cst_36 = arith.constant 0.000000e+00 : f32
    %62 = vector.broadcast %cst_36 : f32 to vector<16x32xf32>
    %63 = arith.maximumf %61, %62 : vector<16x32xf32>
    %c0_37 = arith.constant 0 : index
    %c0_38 = arith.constant 0 : index
    %64 = vector.load %arg14[%c0_37, %c0_38] : memref<32x1xf32, #tpu.memory_space<vmem>>, vector<32x1xf32>
    %65 = arith.truncf %63 : vector<16x32xf32> to vector<16x32xbf16>
    %66 = arith.truncf %64 : vector<32x1xf32> to vector<32x1xbf16>
    %cst_39 = arith.constant dense<0.000000e+00> : vector<16x1xf32>
    %67 = tpu.matmul %65, %66, %cst_39 {dimension_numbers = #tpu.dot_dimension_numbers<[1], [0], [0], [1], [0, 0, 1, 1], [], []>} : vector<16x32xbf16>, vector<32x1xbf16>, vector<16x1xf32> -> vector<16x1xf32>
    %68 = math.tanh %67 : vector<16x1xf32>
    %69 = vector.shape_cast %68 : vector<16x1xf32> to vector<16x1xf32>
    %70 = vector.broadcast %69 : vector<16x1xf32> to vector<16x32xf32>
    %71 = tpu.concatenate %63, %70 in 1 : vector<16x32xf32>, vector<16x32xf32> -> vector<16x64xf32>
    %c0_40 = arith.constant 0 : index
    %c0_41 = arith.constant 0 : index
    %72 = vector.load %arg15[%c0_40, %c0_41] : memref<16x64xf32, #tpu.memory_space<vmem>>, vector<16x64xf32>
    tpu.vector_store %arg15[%c0_40, %c0_41], %71 {strides = array<i32>} : memref<16x64xf32, #tpu.memory_space<vmem>>, vector<16x64xf32>,
    return
  }
}

module attributes {stable_mosaic.version = 11 : i64} {
  func.func @_attpool_layer_kernel(%arg0: memref<8x32xf32, #tpu.memory_space<vmem>>, %arg1: memref<8x1xi32, #tpu.memory_space<vmem>>, %arg2: memref<32x1xf32, #tpu.memory_space<vmem>>, %arg3: memref<1x1xf32, #tpu.memory_space<vmem>>, %arg4: memref<8x32xf32, #tpu.memory_space<vmem>>, %arg5: memref<32x1xi32, #tpu.memory_space<vmem>>, %arg6: memref<1x32xi32, #tpu.memory_space<vmem>>, %arg7: memref<1x32xf32, #tpu.memory_space<vmem>>, %arg8: memref<32x4xf32, #tpu.memory_space<vmem>>, %arg9: memref<4x32xf32, #tpu.memory_space<vmem>>, %arg10: memref<1x32xf32, #tpu.memory_space<vmem>>, %arg11: memref<32x32xf32, #tpu.memory_space<vmem>>, %arg12: memref<1x32xf32, #tpu.memory_space<vmem>>, %arg13: memref<32x32xf32, #tpu.memory_space<vmem>>, %arg14: memref<1x32xf32, #tpu.memory_space<vmem>>, %arg15: memref<32x1xf32, #tpu.memory_space<vmem>>, %arg16: memref<8x32xf32, #tpu.memory_space<vmem>>, %arg17: memref<8x64xf32, #tpu.memory_space<vmem>>) attributes {dimension_semantics = [], scalar_prefetch = 0 : i64, scratch_operands = 0 : i64, tpu.core_type = #tpu.core_type<tc>} {
    %c0 = arith.constant 0 : index
    %c0_0 = arith.constant 0 : index
    %0 = vector.load %arg0[%c0, %c0_0] : memref<8x32xf32, #tpu.memory_space<vmem>>, vector<8x32xf32>
    %c0_1 = arith.constant 0 : index
    %c0_2 = arith.constant 0 : index
    %1 = vector.load %arg4[%c0_1, %c0_2] : memref<8x32xf32, #tpu.memory_space<vmem>>, vector<8x32xf32>
    %c0_3 = arith.constant 0 : index
    %c0_4 = arith.constant 0 : index
    %2 = vector.load %arg2[%c0_3, %c0_4] : memref<32x1xf32, #tpu.memory_space<vmem>>, vector<32x1xf32>
    %3 = arith.truncf %0 : vector<8x32xf32> to vector<8x32xbf16>
    %4 = arith.truncf %2 : vector<32x1xf32> to vector<32x1xbf16>
    %cst = arith.constant dense<0.000000e+00> : vector<8x1xf32>
    %5 = tpu.matmul %3, %4, %cst {dimension_numbers = #tpu.dot_dimension_numbers<[1], [0], [0], [1], [0, 0, 1, 1], [], []>} : vector<8x32xbf16>, vector<32x1xbf16>, vector<8x1xf32> -> vector<8x1xf32>
    %c0_5 = arith.constant 0 : index
    %c0_6 = arith.constant 0 : index
    %6 = vector.load %arg3[%c0_5, %c0_6] : memref<1x1xf32, #tpu.memory_space<vmem>>, vector<1x1xf32>
    %7 = vector.broadcast %6 : vector<1x1xf32> to vector<8x1xf32>
    %8 = arith.addf %5, %7 : vector<8x1xf32>
    %9 = tpu.iota {dimensions = array<i32: 1>} : vector<8x8xi32>
    %c0_7 = arith.constant 0 : index
    %c0_8 = arith.constant 0 : index
    %10 = vector.load %arg1[%c0_7, %c0_8] : memref<8x1xi32, #tpu.memory_space<vmem>>, vector<8x1xi32>
    %11 = vector.broadcast %10 : vector<8x1xi32> to vector<8x8xi32>
    %12 = arith.cmpi eq, %9, %11 : vector<8x8xi32>
    %13 = arith.extui %12 : vector<8x8xi1> to vector<8x8xi32>
    %14 = arith.sitofp %13 : vector<8x8xi32> to vector<8x8xf32>
    %15 = vector.shape_cast %8 : vector<8x1xf32> to vector<8x1xf32>
    %16 = vector.broadcast %15 : vector<8x1xf32> to vector<8x8xf32>
    %cst_9 = arith.constant 0.000000e+00 : f32
    %17 = vector.broadcast %cst_9 : f32 to vector<8x8xf32>
    %18 = arith.cmpf ogt, %14, %17 : vector<8x8xf32>
    %cst_10 = arith.constant -1.000000e+30 : f32
    %19 = vector.broadcast %cst_10 : f32 to vector<8x8xf32>
    %20 = arith.select %18, %16, %19 : vector<8x8xi1>, vector<8x8xf32>
    %cst_11 = arith.constant dense<0xFF800000> : vector<8xf32>
    %21 = vector.multi_reduction <maximumf>, %20, %cst_11 [0] : vector<8x8xf32> to vector<8xf32>
    %22 = vector.shape_cast %21 : vector<8xf32> to vector<1x8xf32>
    %23 = vector.broadcast %22 : vector<1x8xf32> to vector<8x8xf32>
    %24 = arith.subf %20, %23 : vector<8x8xf32>
    %25 = math.exp %24 : vector<8x8xf32>
    %26 = arith.mulf %25, %14 : vector<8x8xf32>
    %cst_12 = arith.constant dense<0.000000e+00> : vector<8xf32>
    %27 = vector.multi_reduction <add>, %26, %cst_12 [0] : vector<8x8xf32> to vector<8xf32>
    %28 = vector.shape_cast %27 : vector<8xf32> to vector<1x8xf32>
    %cst_13 = arith.constant 0.000000e+00 : f32
    %29 = vector.broadcast %cst_13 : f32 to vector<1x8xf32>
    %30 = arith.cmpf ogt, %28, %29 : vector<1x8xf32>
    %cst_14 = arith.constant 1.000000e+00 : f32
    %31 = vector.broadcast %cst_14 : f32 to vector<1x8xf32>
    %32 = arith.select %30, %28, %31 : vector<1x8xi1>, vector<1x8xf32>
    %33 = tpu.reciprocal %32 {approx = true} : vector<1x8xf32> -> vector<1x8xf32>
    %34 = vector.broadcast %33 : vector<1x8xf32> to vector<8x8xf32>
    %35 = arith.mulf %26, %34 : vector<8x8xf32>
    %36 = arith.truncf %35 : vector<8x8xf32> to vector<8x8xbf16>
    %37 = arith.truncf %0 : vector<8x32xf32> to vector<8x32xbf16>
    %cst_15 = arith.constant dense<0.000000e+00> : vector<8x32xf32>
    %38 = tpu.matmul %36, %37, %cst_15 {dimension_numbers = #tpu.dot_dimension_numbers<[0], [0], [1], [1], [0, 1, 1, 1], [], []>} : vector<8x8xbf16>, vector<8x32xbf16>, vector<8x32xf32> -> vector<8x32xf32>
    %39 = arith.addf %1, %38 : vector<8x32xf32>
    %c0_16 = arith.constant 0 : index
    %c0_17 = arith.constant 0 : index
    %40 = vector.load %arg16[%c0_16, %c0_17] : memref<8x32xf32, #tpu.memory_space<vmem>>, vector<8x32xf32>
    tpu.vector_store %arg16[%c0_16, %c0_17], %39 {strides = array<i32>} : memref<8x32xf32, #tpu.memory_space<vmem>>, vector<8x32xf32>,
    %41 = tpu.iota {dimensions = array<i32: 1>} : vector<32x8xi32>
    %c0_18 = arith.constant 0 : index
    %c0_19 = arith.constant 0 : index
    %42 = vector.load %arg5[%c0_18, %c0_19] : memref<32x1xi32, #tpu.memory_space<vmem>>, vector<32x1xi32>
    %43 = vector.broadcast %42 : vector<32x1xi32> to vector<32x8xi32>
    %44 = arith.cmpi eq, %41, %43 : vector<32x8xi32>
    %45 = arith.extui %44 : vector<32x8xi1> to vector<32x8xi32>
    %46 = arith.sitofp %45 : vector<32x8xi32> to vector<32x8xf32>
    %47 = tpu.iota {dimensions = array<i32: 0>} : vector<8x32xi32>
    %c0_20 = arith.constant 0 : index
    %c0_21 = arith.constant 0 : index
    %48 = vector.load %arg6[%c0_20, %c0_21] : memref<1x32xi32, #tpu.memory_space<vmem>>, vector<1x32xi32>
    %49 = vector.broadcast %48 : vector<1x32xi32> to vector<8x32xi32>
    %50 = arith.cmpi eq, %47, %49 : vector<8x32xi32>
    %51 = arith.extui %50 : vector<8x32xi1> to vector<8x32xi32>
    %52 = arith.sitofp %51 : vector<8x32xi32> to vector<8x32xf32>
    %c0_22 = arith.constant 0 : index
    %c0_23 = arith.constant 0 : index
    %53 = vector.load %arg7[%c0_22, %c0_23] : memref<1x32xf32, #tpu.memory_space<vmem>>, vector<1x32xf32>
    %54 = vector.broadcast %53 : vector<1x32xf32> to vector<8x32xf32>
    %55 = arith.mulf %52, %54 : vector<8x32xf32>
    %56 = arith.truncf %46 : vector<32x8xf32> to vector<32x8xbf16>
    %57 = arith.truncf %0 : vector<8x32xf32> to vector<8x32xbf16>
    %cst_24 = arith.constant dense<0.000000e+00> : vector<32x32xf32>
    %58 = tpu.matmul %56, %57, %cst_24 {dimension_numbers = #tpu.dot_dimension_numbers<[1], [0], [0], [1], [0, 0, 1, 1], [], []>} : vector<32x8xbf16>, vector<8x32xbf16>, vector<32x32xf32> -> vector<32x32xf32>
    %c0_25 = arith.constant 0 : index
    %c0_26 = arith.constant 0 : index
    %59 = vector.load %arg8[%c0_25, %c0_26] : memref<32x4xf32, #tpu.memory_space<vmem>>, vector<32x4xf32>
    %c0_27 = arith.constant 0 : index
    %c0_28 = arith.constant 0 : index
    %60 = vector.load %arg9[%c0_27, %c0_28] : memref<4x32xf32, #tpu.memory_space<vmem>>, vector<4x32xf32>
    %61 = arith.truncf %59 : vector<32x4xf32> to vector<32x4xbf16>
    %62 = arith.truncf %60 : vector<4x32xf32> to vector<4x32xbf16>
    %cst_29 = arith.constant dense<0.000000e+00> : vector<32x32xf32>
    %63 = tpu.matmul %61, %62, %cst_29 {dimension_numbers = #tpu.dot_dimension_numbers<[1], [0], [0], [1], [0, 0, 1, 1], [], []>} : vector<32x4xbf16>, vector<4x32xbf16>, vector<32x32xf32> -> vector<32x32xf32>
    %c0_30 = arith.constant 0 : index
    %c0_31 = arith.constant 0 : index
    %64 = vector.load %arg10[%c0_30, %c0_31] : memref<1x32xf32, #tpu.memory_space<vmem>>, vector<1x32xf32>
    %65 = vector.broadcast %64 : vector<1x32xf32> to vector<32x32xf32>
    %66 = arith.addf %63, %65 : vector<32x32xf32>
    %67 = arith.addf %58, %66 : vector<32x32xf32>
    %cst_32 = arith.constant 0.000000e+00 : f32
    %68 = vector.broadcast %cst_32 : f32 to vector<32x32xf32>
    %69 = arith.maximumf %67, %68 : vector<32x32xf32>
    %70 = arith.truncf %55 : vector<8x32xf32> to vector<8x32xbf16>
    %71 = arith.truncf %69 : vector<32x32xf32> to vector<32x32xbf16>
    %cst_33 = arith.constant dense<0.000000e+00> : vector<8x32xf32>
    %72 = tpu.matmul %70, %71, %cst_33 {dimension_numbers = #tpu.dot_dimension_numbers<[1], [0], [0], [1], [0, 0, 1, 1], [], []>} : vector<8x32xbf16>, vector<32x32xbf16>, vector<8x32xf32> -> vector<8x32xf32>
    %73 = arith.addf %0, %72 : vector<8x32xf32>
    %c0_34 = arith.constant 0 : index
    %c0_35 = arith.constant 0 : index
    %74 = vector.load %arg11[%c0_34, %c0_35] : memref<32x32xf32, #tpu.memory_space<vmem>>, vector<32x32xf32>
    %75 = arith.truncf %73 : vector<8x32xf32> to vector<8x32xbf16>
    %76 = arith.truncf %74 : vector<32x32xf32> to vector<32x32xbf16>
    %cst_36 = arith.constant dense<0.000000e+00> : vector<8x32xf32>
    %77 = tpu.matmul %75, %76, %cst_36 {dimension_numbers = #tpu.dot_dimension_numbers<[1], [0], [0], [1], [0, 0, 1, 1], [], []>} : vector<8x32xbf16>, vector<32x32xbf16>, vector<8x32xf32> -> vector<8x32xf32>
    %c0_37 = arith.constant 0 : index
    %c0_38 = arith.constant 0 : index
    %78 = vector.load %arg12[%c0_37, %c0_38] : memref<1x32xf32, #tpu.memory_space<vmem>>, vector<1x32xf32>
    %79 = vector.broadcast %78 : vector<1x32xf32> to vector<8x32xf32>
    %80 = arith.addf %77, %79 : vector<8x32xf32>
    %cst_39 = arith.constant 0.000000e+00 : f32
    %81 = vector.broadcast %cst_39 : f32 to vector<8x32xf32>
    %82 = arith.maximumf %80, %81 : vector<8x32xf32>
    %c0_40 = arith.constant 0 : index
    %c0_41 = arith.constant 0 : index
    %83 = vector.load %arg13[%c0_40, %c0_41] : memref<32x32xf32, #tpu.memory_space<vmem>>, vector<32x32xf32>
    %84 = arith.truncf %82 : vector<8x32xf32> to vector<8x32xbf16>
    %85 = arith.truncf %83 : vector<32x32xf32> to vector<32x32xbf16>
    %cst_42 = arith.constant dense<0.000000e+00> : vector<8x32xf32>
    %86 = tpu.matmul %84, %85, %cst_42 {dimension_numbers = #tpu.dot_dimension_numbers<[1], [0], [0], [1], [0, 0, 1, 1], [], []>} : vector<8x32xbf16>, vector<32x32xbf16>, vector<8x32xf32> -> vector<8x32xf32>
    %c0_43 = arith.constant 0 : index
    %c0_44 = arith.constant 0 : index
    %87 = vector.load %arg14[%c0_43, %c0_44] : memref<1x32xf32, #tpu.memory_space<vmem>>, vector<1x32xf32>
    %88 = vector.broadcast %87 : vector<1x32xf32> to vector<8x32xf32>
    %89 = arith.addf %86, %88 : vector<8x32xf32>
    %cst_45 = arith.constant 0.000000e+00 : f32
    %90 = vector.broadcast %cst_45 : f32 to vector<8x32xf32>
    %91 = arith.maximumf %89, %90 : vector<8x32xf32>
    %c0_46 = arith.constant 0 : index
    %c0_47 = arith.constant 0 : index
    %92 = vector.load %arg15[%c0_46, %c0_47] : memref<32x1xf32, #tpu.memory_space<vmem>>, vector<32x1xf32>
    %93 = arith.truncf %91 : vector<8x32xf32> to vector<8x32xbf16>
    %94 = arith.truncf %92 : vector<32x1xf32> to vector<32x1xbf16>
    %cst_48 = arith.constant dense<0.000000e+00> : vector<8x1xf32>
    %95 = tpu.matmul %93, %94, %cst_48 {dimension_numbers = #tpu.dot_dimension_numbers<[1], [0], [0], [1], [0, 0, 1, 1], [], []>} : vector<8x32xbf16>, vector<32x1xbf16>, vector<8x1xf32> -> vector<8x1xf32>
    %96 = math.tanh %95 : vector<8x1xf32>
    %97 = vector.shape_cast %96 : vector<8x1xf32> to vector<8x1xf32>
    %98 = vector.broadcast %97 : vector<8x1xf32> to vector<8x32xf32>
    %99 = tpu.concatenate %91, %98 in 1 : vector<8x32xf32>, vector<8x32xf32> -> vector<8x64xf32>
    %c0_49 = arith.constant 0 : index
    %c0_50 = arith.constant 0 : index
    %100 = vector.load %arg17[%c0_49, %c0_50] : memref<8x64xf32, #tpu.memory_space<vmem>>, vector<8x64xf32>
    tpu.vector_store %arg17[%c0_49, %c0_50], %99 {strides = array<i32>} : memref<8x64xf32, #tpu.memory_space<vmem>>, vector<8x64xf32>,
    return
  }
}

module attributes {stable_mosaic.version = 11 : i64} {
  func.func @_attpool_kernel(%arg0: memref<4x32xf32, #tpu.memory_space<vmem>>, %arg1: memref<4x1xi32, #tpu.memory_space<vmem>>, %arg2: memref<32x1xf32, #tpu.memory_space<vmem>>, %arg3: memref<1x1xf32, #tpu.memory_space<vmem>>, %arg4: memref<8x32xf32, #tpu.memory_space<vmem>>, %arg5: memref<8x32xf32, #tpu.memory_space<vmem>>) attributes {dimension_semantics = [], scalar_prefetch = 0 : i64, scratch_operands = 0 : i64, tpu.core_type = #tpu.core_type<tc>} {
    %c0 = arith.constant 0 : index
    %c0_0 = arith.constant 0 : index
    %0 = vector.load %arg4[%c0, %c0_0] : memref<8x32xf32, #tpu.memory_space<vmem>>, vector<8x32xf32>
    %c0_1 = arith.constant 0 : index
    %c0_2 = arith.constant 0 : index
    %1 = vector.load %arg0[%c0_1, %c0_2] : memref<4x32xf32, #tpu.memory_space<vmem>>, vector<4x32xf32>
    %c0_3 = arith.constant 0 : index
    %c0_4 = arith.constant 0 : index
    %2 = vector.load %arg2[%c0_3, %c0_4] : memref<32x1xf32, #tpu.memory_space<vmem>>, vector<32x1xf32>
    %3 = arith.truncf %1 : vector<4x32xf32> to vector<4x32xbf16>
    %4 = arith.truncf %2 : vector<32x1xf32> to vector<32x1xbf16>
    %cst = arith.constant dense<0.000000e+00> : vector<4x1xf32>
    %5 = tpu.matmul %3, %4, %cst {dimension_numbers = #tpu.dot_dimension_numbers<[1], [0], [0], [1], [0, 0, 1, 1], [], []>} : vector<4x32xbf16>, vector<32x1xbf16>, vector<4x1xf32> -> vector<4x1xf32>
    %c0_5 = arith.constant 0 : index
    %c0_6 = arith.constant 0 : index
    %6 = vector.load %arg3[%c0_5, %c0_6] : memref<1x1xf32, #tpu.memory_space<vmem>>, vector<1x1xf32>
    %7 = vector.broadcast %6 : vector<1x1xf32> to vector<4x1xf32>
    %8 = arith.addf %5, %7 : vector<4x1xf32>
    %9 = tpu.iota {dimensions = array<i32: 1>} : vector<4x8xi32>
    %c0_7 = arith.constant 0 : index
    %c0_8 = arith.constant 0 : index
    %10 = vector.load %arg1[%c0_7, %c0_8] : memref<4x1xi32, #tpu.memory_space<vmem>>, vector<4x1xi32>
    %11 = vector.broadcast %10 : vector<4x1xi32> to vector<4x8xi32>
    %12 = arith.cmpi eq, %9, %11 : vector<4x8xi32>
    %13 = arith.extui %12 : vector<4x8xi1> to vector<4x8xi32>
    %14 = arith.sitofp %13 : vector<4x8xi32> to vector<4x8xf32>
    %15 = vector.shape_cast %8 : vector<4x1xf32> to vector<4x1xf32>
    %16 = vector.broadcast %15 : vector<4x1xf32> to vector<4x8xf32>
    %cst_9 = arith.constant 0.000000e+00 : f32
    %17 = vector.broadcast %cst_9 : f32 to vector<4x8xf32>
    %18 = arith.cmpf ogt, %14, %17 : vector<4x8xf32>
    %cst_10 = arith.constant -1.000000e+30 : f32
    %19 = vector.broadcast %cst_10 : f32 to vector<4x8xf32>
    %20 = arith.select %18, %16, %19 : vector<4x8xi1>, vector<4x8xf32>
    %cst_11 = arith.constant dense<0xFF800000> : vector<8xf32>
    %21 = vector.multi_reduction <maximumf>, %20, %cst_11 [0] : vector<4x8xf32> to vector<8xf32>
    %22 = vector.shape_cast %21 : vector<8xf32> to vector<1x8xf32>
    %23 = vector.broadcast %22 : vector<1x8xf32> to vector<4x8xf32>
    %24 = arith.subf %20, %23 : vector<4x8xf32>
    %25 = math.exp %24 : vector<4x8xf32>
    %26 = arith.mulf %25, %14 : vector<4x8xf32>
    %cst_12 = arith.constant dense<0.000000e+00> : vector<8xf32>
    %27 = vector.multi_reduction <add>, %26, %cst_12 [0] : vector<4x8xf32> to vector<8xf32>
    %28 = vector.shape_cast %27 : vector<8xf32> to vector<1x8xf32>
    %cst_13 = arith.constant 0.000000e+00 : f32
    %29 = vector.broadcast %cst_13 : f32 to vector<1x8xf32>
    %30 = arith.cmpf ogt, %28, %29 : vector<1x8xf32>
    %cst_14 = arith.constant 1.000000e+00 : f32
    %31 = vector.broadcast %cst_14 : f32 to vector<1x8xf32>
    %32 = arith.select %30, %28, %31 : vector<1x8xi1>, vector<1x8xf32>
    %33 = tpu.reciprocal %32 {approx = true} : vector<1x8xf32> -> vector<1x8xf32>
    %34 = vector.broadcast %33 : vector<1x8xf32> to vector<4x8xf32>
    %35 = arith.mulf %26, %34 : vector<4x8xf32>
    %36 = arith.truncf %35 : vector<4x8xf32> to vector<4x8xbf16>
    %37 = arith.truncf %1 : vector<4x32xf32> to vector<4x32xbf16>
    %cst_15 = arith.constant dense<0.000000e+00> : vector<8x32xf32>
    %38 = tpu.matmul %36, %37, %cst_15 {dimension_numbers = #tpu.dot_dimension_numbers<[0], [0], [1], [1], [0, 1, 1, 1], [], []>} : vector<4x8xbf16>, vector<4x32xbf16>, vector<8x32xf32> -> vector<8x32xf32>
    %39 = arith.addf %0, %38 : vector<8x32xf32>
    %c0_16 = arith.constant 0 : index
    %c0_17 = arith.constant 0 : index
    %40 = vector.load %arg5[%c0_16, %c0_17] : memref<8x32xf32, #tpu.memory_space<vmem>>, vector<8x32xf32>
    tpu.vector_store %arg5[%c0_16, %c0_17], %39 {strides = array<i32>} : memref<8x32xf32, #tpu.memory_space<vmem>>, vector<8x32xf32>,
    return
  }
}

</mosaic_0001>

<bundles_post_ra>
// kernel: squeeze.2
= control target key start
LH: loop header
LB: loop body
LE: loop exit
PB: predicated region body
PF: predicated region fallthrough
CT: control target
= control target key end

     0   :  { %vm7_vm0 = vcmask 64512   ;;  %s39_s0 = inlined_call_operand.vmem [shape: f32[16], index: 0, kind: input, shape index: {}]   ;;  %s40_s1 = inlined_call_operand.vmem [shape: f32[2,8], index: 1, kind: output, shape index: {}]  }
   0x1   :  { %v4_v0 = vld [vmem:[%s39_s0] sm:$0x1]  ;;  %s22_s0 = smov 120  }
   0x2   :  { %5 = vst [vmem:[#allocation1] sm:$0x1] %v4_v0 }
   0x9   :  { %v9_v1 = vld [vmem:[#allocation1] sm:$0x1]  }
   0xa   :  { %v6_v2 = vld [vmem:[#allocation1] sm:$0x1]   ;;  %10 = vrot.lane.b32.xlu0 %v9_v1, %s22_s0 }
   0xb   :  { %8 = vst.msk [vmem:[#allocation0] sm:$0x1] %vm7_vm0, %v6_v2  }
  0x7c   :  { %v11_v3 = vpop.permute.xlu0 %10  }
  0x7d   :  { %14 = vst.msk [vmem:[#allocation0 + $0x1] sm:$0x1] %vm7_vm0, %v11_v3  }
  0x84   :  { %v17_v4 = vld [vmem:[#allocation0] sm:$0x3] }
  0x85   :  { %20 = vst [vmem:[%s40_s1] sm:$0x3] %v17_v4 }

// kernel: squeeze.3
= control target key start
LH: loop header
LB: loop body
LE: loop exit
PB: predicated region body
PF: predicated region fallthrough
CT: control target
= control target key end

     0   :  { %vm7_vm0 = vcmask 31744   ;;  %s39_s0 = inlined_call_operand.vmem [shape: f32[8], index: 0, kind: input, shape index: {}]   ;;  %s40_s1 = inlined_call_operand.vmem [shape: f32[2,4], index: 1, kind: output, shape index: {}]  }
   0x1   :  { %v4_v0 = vld [vmem:[%s39_s0] sm:$0x1]  ;;  %s22_s0 = smov 124  }
   0x2   :  { %5 = vst [vmem:[#allocation1] sm:$0x1] %v4_v0 }
   0x9   :  { %v9_v1 = vld [vmem:[#allocation1] sm:$0x1]  }
   0xa   :  { %v6_v2 = vld [vmem:[#allocation1] sm:$0x1]   ;;  %10 = vrot.lane.b32.xlu0 %v9_v1, %s22_s0 }
   0xb   :  { %8 = vst.msk [vmem:[#allocation0] sm:$0x1] %vm7_vm0, %v6_v2  }
  0x7c   :  { %v11_v3 = vpop.permute.xlu0 %10  }
  0x7d   :  { %14 = vst.msk [vmem:[#allocation0 + $0x1] sm:$0x1] %vm7_vm0, %v11_v3  }
  0x84   :  { %v17_v4 = vld [vmem:[#allocation0] sm:$0x3] }
  0x85   :  { %20 = vst [vmem:[%s40_s1] sm:$0x3] %v17_v4 }

// kernel: gine_conv_encoder_forward.3
= control target key start
LH: loop header
LB: loop body
LE: loop exit
PB: predicated region body
PF: predicated region fallthrough
CT: control target
= control target key end

     0   :  { %v632_v0 = vmov 0   ;;  %vm67_vm0 = vcmask 261120   ;;  %vm297_vm1 = vcmask 1041409   ;;  %vm300_vm2 = vcmask 1042434   ;;  %s914_s1 = inlined_call_operand.vmem [shape: f32[16,1], index: 1, kind: input, shape index: {}]   ;;  %s915_s0 = inlined_call_operand.vmem [shape: f32[16,8,32], index: 0, kind: input, shape index: {}]   ;;  %s916_s2 = inlined_call_operand.vmem [shape: f32[32,32], index: 2, kind: input, shape index: {}]   ;;  %s917_s3 = inlined_call_operand.vmem [shape: f32[1,32], index: 3, kind: input, shape index: {}]   ;;  %s918_s4 = inlined_call_operand.vmem [shape: s32[32,1], index: 4, kind: input, shape index: {}]   ;;  %s919_s9 = inlined_call_operand.vmem [shape: f32[1,32], index: 9, kind: input, shape index: {}]   ;;  %s920_s8 = inlined_call_operand.vmem [shape: f32[4,32], index: 8, kind: input, shape index: {}]   ;;  %s921_s7 = inlined_call_operand.vmem [shape: f32[32,4], index: 7, kind: input, shape index: {}]   ;;  %s922_s5 = inlined_call_operand.vmem [shape: s32[1,32], index: 5, kind: input, shape index: {}]   ;;  %s923_s6 = inlined_call_operand.vmem [shape: f32[1,32], index: 6, kind: input, shape index: {}]   ;;  %s924_s10 = inlined_call_operand.vmem [shape: f32[32,32], index: 10, kind: input, shape index: {}]   ;;  %s925_s11 = inlined_call_operand.vmem [shape: f32[1,32], index: 11, kind: input, shape index: {}]   ;;  %s926_s12 = inlined_call_operand.vmem [shape: f32[32,32], index: 12, kind: input, shape index: {}]   ;;  %s927_s13 = inlined_call_operand.vmem [shape: f32[1,32], index: 13, kind: input, shape index: {}]   ;;  %s928_s14 = inlined_call_operand.vmem [shape: f32[32,1], index: 14, kind: input, shape index: {}]   ;;  %s929_s15 = inlined_call_operand.vmem [shape: f32[16,64], index: 15, kind: output, shape index: {}]  }
   0x1   :  { %615 = vset.pattern.permute.xlu0 %v632_v0  ;;  %v180_v1 = vld [vmem:[%s914_s1] sm:$0xff]  ;;  %616 = vset.pattern.permute.xlu1 %v632_v0  ;;  %v181_v2 = vld [vmem:[%s914_s1 + $0x8] sm:$0xff]  ;;  %v53_v9 = vld [vmem:[%s915_s0 + $0x10] sm:$0xff]  ;;  %vm303_vm3 = vcmask 1043459   ;;  %vm306_vm4 = vcmask 1044484   ;;  %vm309_vm5 = vcmask 1045509  }
   0x2   :  { %624 = vrcp.f32 %v180_v1  ;;  %617 = vset.pattern.permute.xlu2 %v632_v0  ;;  %v51_v5 = vld [vmem:[%s915_s0] sm:$0xff]  ;;  %v52_v7 = vld [vmem:[%s915_s0 + $0x8] sm:$0xff]  ;;  %v54_v10 = vld [vmem:[%s915_s0 + $0x18] sm:$0xff]  ;;  %v82_v17 = vsel %vm67_vm0, %v53_v9, 0.0  ;;  %vm312_vm6 = vcmask 1046534   ;;  %vm315_vm7 = vcmask 1047559  }
   0x3   :  { %626 = vrcp.f32 %v181_v2  ;;  %v68_v6 = vsel %vm67_vm0, %v51_v5, 0.0  ;;  %v55_v11 = vld [vmem:[%s915_s0 + $0x20] sm:$0xff]  ;;  %v75_v12 = vsel %vm67_vm0, %v52_v7, 0.0  ;;  %v56_v14 = vld [vmem:[%s915_s0 + $0x28] sm:$0xff]  ;;  %v57_v15 = vld [vmem:[%s915_s0 + $0x30] sm:$0xff]  ;;  %v89_v20 = vsel %vm67_vm0, %v54_v10, 0.0 }
   0x4   :  { %v69_v8 = vrot.slane %v68_v6, 4  ;;  %v59_v13 = vld [vmem:[%s915_s0 + $0x40] sm:$0xff]  ;;  %v60_v18 = vld [vmem:[%s915_s0 + $0x48] sm:$0xff]  ;;  %v58_v19 = vld [vmem:[%s915_s0 + $0x38] sm:$0xff]  ;;  %v96_v21 = vsel %vm67_vm0, %v55_v11, 0.0  ;;  %v76_v22 = vrot.slane %v75_v12, 4 }
   0x5   :  { %v124_v23 = vsel %vm67_vm0, %v59_v13, 0.0  ;;  %v103_v24 = vsel %vm67_vm0, %v56_v14, 0.0  ;;  %v110_v25 = vsel %vm67_vm0, %v57_v15, 0.0  ;;  %v83_v26 = vrot.slane %v82_v17, 4  ;;  %v61_v27 = vld [vmem:[%s915_s0 + $0x50] sm:$0xff]  ;;  %v62_v32 = vld [vmem:[%s915_s0 + $0x58] sm:$0xff] }
   0x6   :  { %v746_v16 = vadd.f32 %v69_v8, %v68_v6  ;;  %v131_v28 = vsel %vm67_vm0, %v60_v18, 0.0  ;;  %v90_v29 = vrot.slane %v89_v20, 4  ;;  %v117_v30 = vsel %vm67_vm0, %v58_v19, 0.0  ;;  %v63_v33 = vld [vmem:[%s915_s0 + $0x60] sm:$0xff]  ;;  %v64_v36 = vld [vmem:[%s915_s0 + $0x68] sm:$0xff]  ;;  %v65_v37 = vld [vmem:[%s915_s0 + $0x70] sm:$0xff] }
   0x7   :  { %v97_v34 = vrot.slane %v96_v21, 4  ;;  %v125_v35 = vrot.slane %v124_v23, 4  ;;  %v66_v38 = vld [vmem:[%s915_s0 + $0x78] sm:$0xff]  ;;  %v104_v39 = vrot.slane %v103_v24, 4  ;;  %v111_v40 = vrot.slane %v110_v25, 4  ;;  %v240_v58 = vld [vmem:[%s916_s2 + $0x10] sm:$0xff] }
   0x8   :  { %v625_v3 = vpop.eup %624  ;;  %v71_v31 = vrot.slane %v746_v16, 2  ;;  %v77_v41 = vadd.f32 %v76_v22, %v75_v12  ;;  %v132_v42 = vrot.slane %v131_v28, 4  ;;  %v138_v43 = vsel %vm67_vm0, %v61_v27, 0.0  ;;  %v241_v59 = vld [vmem:[%s916_s2 + $0x18] sm:$0xff]  ;;  %v238_v60 = vld [vmem:[%s916_s2] sm:$0xff]  ;;  %v239_v1 = vld [vmem:[%s916_s2 + $0x8] sm:$0xff] }
   0x9   :  { %186 = vperm.xlu0 %615, %v625_v3   ;;  %v627_v4 = vpop.eup %626  ;;  %v118_v44 = vrot.slane %v117_v30, 4  ;;  %v84_v45 = vadd.f32 %v83_v26, %v82_v17  ;;  %v91_v46 = vadd.f32 %v90_v29, %v89_v20  ;;  %v145_v47 = vsel %vm67_vm0, %v62_v32, 0.0 }
   0xa   :  { %v152_v48 = vsel %vm67_vm0, %v63_v33, 0.0  ;;  %v98_v49 = vadd.f32 %v97_v34, %v96_v21  ;;  %v159_v50 = vsel %vm67_vm0, %v64_v36, 0.0  ;;  %v166_v51 = vsel %vm67_vm0, %v65_v37, 0.0 }
   0xb   :  { %v173_v52 = vsel %vm67_vm0, %v66_v38, 0.0  ;;  %v126_v53 = vadd.f32 %v125_v35, %v124_v23  ;;  %v139_v54 = vrot.slane %v138_v43, 4  ;;  %v105_v55 = vadd.f32 %v104_v39, %v103_v24 }
   0xc   :  { %v112_v56 = vadd.f32 %v111_v40, %v110_v25  ;;  %v133_v57 = vadd.f32 %v132_v42, %v131_v28  ;;  %v119_v61 = vadd.f32 %v118_v44, %v117_v30  ;;  %v146_v62 = vrot.slane %v145_v47, 4 }
   0xd   :  { %v153_v63 = vrot.slane %v152_v48, 4  ;;  %v259_v0 = vpack.c.bf16 %v241_v59, %v240_v58  ;;  %v160_v2 = vrot.slane %v159_v50, 4  ;;  %v167_v3 = vrot.slane %v166_v51, 4  ;;  %v353_v58 = vld [vmem:[%s918_s4 + $0x10] sm:$0xff] }
   0xe   :  { %v78_v5 = vrot.slane %v77_v41, 2  ;;  %v85_v6 = vrot.slane %v84_v45, 2  ;;  %v92_v7 = vrot.slane %v91_v46, 2  ;;  %v99_v8 = vrot.slane %v98_v49, 2  ;;  %362 = vperm.xlu2 %617, %v353_v58  }
   0xf   :  { %v127_v9 = vrot.slane %v126_v53, 2  ;;  %v140_v10 = vadd.f32 %v139_v54, %v138_v43  ;;  %341 = vmatpush.bf16.msra.mxu0 %v259_v0  ;;  %v258_v11 = vpack.c.bf16 %v239_v1, %v238_v60  ;;  %v106_v12 = vrot.slane %v105_v55, 2 }
  0x10   :  { %v134_v13 = vrot.slane %v133_v57, 2  ;;  %v113_v14 = vrot.slane %v112_v56, 2  ;;  %v120_v15 = vrot.slane %v119_v61, 2  ;;  %v147_v17 = vadd.f32 %v146_v62, %v145_v47 }
  0x11   :  { %190 = vperm.xlu0 %615, %v627_v4   ;;  %v174_v4 = vrot.slane %v173_v52, 4  ;;  %v154_v18 = vadd.f32 %v153_v63, %v152_v48  ;;  %v161_v19 = vadd.f32 %v160_v2, %v159_v50  ;;  %v168_v20 = vadd.f32 %v167_v3, %v166_v51 }
  0x12   :  { %v72_v22 = vadd.f32 %v71_v31, %v746_v16  ;;  %v79_v23 = vadd.f32 %v78_v5, %v77_v41  ;;  %v86_v24 = vadd.f32 %v85_v6, %v84_v45  ;;  %v93_v25 = vadd.f32 %v92_v7, %v91_v46 }
  0x13   :  { %v175_v21 = vadd.f32 %v174_v4, %v173_v52  ;;  %v128_v26 = vadd.f32 %v127_v9, %v126_v53  ;;  %v141_v27 = vrot.slane %v140_v10, 2  ;;  %342 = vmatpush.bf16.msra.mxu0 %v258_v11  ;;  %v100_v28 = vadd.f32 %v99_v8, %v98_v49 }
  0x14   :  { %v107_v29 = vadd.f32 %v106_v12, %v105_v55  ;;  %v135_v30 = vadd.f32 %v134_v13, %v133_v57  ;;  %v114_v32 = vadd.f32 %v113_v14, %v112_v56  ;;  %v121_v33 = vadd.f32 %v120_v15, %v119_v61  ;;  %v351_v57 = vld [vmem:[%s918_s4] sm:$0xff] }
  0x15   :  { %v148_v34 = vrot.slane %v147_v17, 2  ;;  %v155_v35 = vrot.slane %v154_v18, 2  ;;  %v162_v36 = vrot.slane %v161_v19, 2  ;;  %v169_v37 = vrot.slane %v168_v20, 2  ;;  %356 = vperm.xlu1 %616, %v351_v57  }
  0x16   :  { %v176_v38 = vrot.slane %v175_v21, 2  ;;  %v73_v39 = vrot.slane %v72_v22, 1  ;;  %v80_v40 = vrot.slane %v79_v23, 1  ;;  %v87_v42 = vrot.slane %v86_v24, 1 }
  0x17   :  { %v94_v16 = vrot.slane %v93_v25, 1  ;;  %v129_v31 = vrot.slane %v128_v26, 1  ;;  %v142_v41 = vadd.f32 %v141_v27, %v140_v10  ;;  %v101_v43 = vrot.slane %v100_v28, 1 }
  0x18   :  { %v108_v44 = vrot.slane %v107_v29, 1  ;;  %v136_v45 = vrot.slane %v135_v30, 1  ;;  %v115_v46 = vrot.slane %v114_v32, 1  ;;  %v122_v47 = vrot.slane %v121_v33, 1 }
  0x19   :  { %v149_v48 = vadd.f32 %v148_v34, %v147_v17  ;;  %v156_v49 = vadd.f32 %v155_v35, %v154_v18  ;;  %v163_v50 = vadd.f32 %v162_v36, %v161_v19  ;;  %v170_v51 = vadd.f32 %v169_v37, %v168_v20 }
  0x1a   :  { %v177_v52 = vadd.f32 %v176_v38, %v175_v21  ;;  %v74_v53 = vadd.f32 %v73_v39, %v72_v22  ;;  %v81_v54 = vadd.f32 %v80_v40, %v79_v23  ;;  %v88_v55 = vadd.f32 %v87_v42, %v86_v24  ;;  %v352_v21 = vld [vmem:[%s918_s4 + $0x8] sm:$0xff] }
  0x1b   :  { %v95_v56 = vadd.f32 %v94_v16, %v93_v25  ;;  %v130_v59 = vadd.f32 %v129_v31, %v128_v26  ;;  %v143_v60 = vrot.slane %v142_v41, 1  ;;  %v102_v61 = vadd.f32 %v101_v43, %v100_v28  ;;  %v354_v26 = vld [vmem:[%s918_s4 + $0x18] sm:$0xff] }
  0x1c   :  { %v109_v62 = vadd.f32 %v108_v44, %v107_v29  ;;  %v137_v63 = vadd.f32 %v136_v45, %v135_v30  ;;  %v116_v0 = vadd.f32 %v115_v46, %v114_v32  ;;  %v123_v1 = vadd.f32 %v122_v47, %v121_v33  ;;  %365 = vperm.xlu2 %617, %v354_v26  }
  0x1d   :  { %v150_v2 = vrot.slane %v149_v48, 1  ;;  %v157_v4 = vrot.slane %v156_v49, 1  ;;  %v164_v5 = vrot.slane %v163_v50, 1  ;;  %v171_v6 = vrot.slane %v170_v51, 1  ;;  %359 = vperm.xlu1 %616, %v352_v21  }
  0x1e   :  { %v178_v7 = vrot.slane %v177_v52, 1  ;;  %v144_v28 = vadd.f32 %v143_v60, %v142_v41  ;;  %vm418_vm8 = vcmask 1041408   ;;  %vm411_vm9 = vcmask 31744  }
  0x1f   :  { %v151_v29 = vadd.f32 %v150_v2, %v149_v48  ;;  %v158_v32 = vadd.f32 %v157_v4, %v156_v49  ;;  %v165_v33 = vadd.f32 %v164_v5, %v163_v50  ;;  %v172_v34 = vadd.f32 %v171_v6, %v170_v51 }
  0x20   :  { %v179_v35 = vadd.f32 %v178_v7, %v177_v52  ;;  %vm441_vm12 = vcmask 130048  }
  0x7b   :  { %v187_v3 = vpop.permute.xlu0 %186 }
  0x7c   :  { %v192_v8 = vrot.slane %v187_v3, 1  ;;  %v193_v9 = vrot.slane %v187_v3, 2  ;;  %v194_v10 = vrot.slane %v187_v3, 3  ;;  %v222_v11 = vmul.f32 %v187_v3, %v74_v53 }
  0x7d   :  { %v195_v12 = vrot.slane %v187_v3, 4  ;;  %v196_v13 = vrot.slane %v187_v3, 5  ;;  %v197_v14 = vrot.slane %v187_v3, 6  ;;  %v198_v15 = vrot.slane %v187_v3, 7 }
  0x7e   :  { %v223_v17 = vmul.f32 %v192_v8, %v81_v54  ;;  %v224_v18 = vmul.f32 %v193_v9, %v88_v55  ;;  %v242_v19 = vpack.c.bf16 %v222_v11, %v222_v11  ;;  %v225_v20 = vmul.f32 %v194_v10, %v95_v56 }
  0x7f   :  { %v226_v22 = vmul.f32 %v195_v12, %v102_v61  ;;  %v227_v23 = vmul.f32 %v196_v13, %v109_v62  ;;  %v228_v24 = vmul.f32 %v197_v14, %v116_v0  ;;  %v229_v25 = vmul.f32 %v198_v15, %v123_v1 }
  0x80   :  { %v243_v27 = vpack.c.bf16 %v223_v17, %v223_v17  ;;  %v244_v30 = vpack.c.bf16 %v224_v18, %v224_v18  ;;  %v280_v36 = vunpack.c.l.b16 %v242_v19  ;;  %v245_v37 = vpack.c.bf16 %v225_v20, %v225_v20 }
  0x81   :  { %v246_v38 = vpack.c.bf16 %v226_v22, %v226_v22  ;;  %v247_v39 = vpack.c.bf16 %v227_v23, %v227_v23  ;;  %v248_v16 = vpack.c.bf16 %v228_v24, %v228_v24  ;;  %v249_v31 = vpack.c.bf16 %v229_v25, %v229_v25 }
  0x82   :  { %v281_v40 = vunpack.c.l.b16 %v243_v27  ;;  %v282_v43 = vunpack.c.l.b16 %v244_v30  ;;  %v283_v54 = vunpack.c.l.b16 %v245_v37 }
  0x83   :  { %v191_v42 = vpop.permute.xlu0 %190  ;;  %v284_v3 = vunpack.c.l.b16 %v246_v38  ;;  %v285_v7 = vunpack.c.l.b16 %v247_v39  ;;  %v286_v8 = vunpack.c.l.b16 %v248_v16  ;;  %v287_v9 = vunpack.c.l.b16 %v249_v31 }
  0x84   :  { %v199_v41 = vrot.slane %v191_v42, 1  ;;  %v200_v44 = vrot.slane %v191_v42, 2  ;;  %v201_v45 = vrot.slane %v191_v42, 3  ;;  %v230_v46 = vmul.f32 %v191_v42, %v130_v59 }
  0x85   :  { %v202_v47 = vrot.slane %v191_v42, 4  ;;  %v203_v48 = vrot.slane %v191_v42, 5  ;;  %v204_v49 = vrot.slane %v191_v42, 6  ;;  %v205_v50 = vrot.slane %v191_v42, 7 }
  0x86   :  { %v231_v51 = vmul.f32 %v199_v41, %v137_v63  ;;  %v232_v52 = vmul.f32 %v200_v44, %v144_v28  ;;  %v233_v53 = vmul.f32 %v201_v45, %v151_v29  ;;  %v250_v60 = vpack.c.bf16 %v230_v46, %v230_v46  ;;  %v403_v44 = vld [vmem:[%s920_s8] sm:$0xf]  ;;  %v400_v46 = vld [vmem:[%s921_s7 + $0x8] sm:$0xff] }
  0x87   :  { %v234_v55 = vmul.f32 %v202_v47, %v158_v32  ;;  %v235_v56 = vmul.f32 %v203_v48, %v165_v33  ;;  %v236_v57 = vmul.f32 %v204_v49, %v172_v34  ;;  %v237_v58 = vmul.f32 %v205_v50, %v179_v35  ;;  %v399_v45 = vld [vmem:[%s921_s7] sm:$0xff]  ;;  %v401_v50 = vld [vmem:[%s921_s7 + $0x10] sm:$0xff] }
  0x88   :  { %v251_v61 = vpack.c.bf16 %v231_v51, %v231_v51  ;;  %v252_v62 = vpack.c.bf16 %v232_v52, %v232_v52  ;;  %v253_v59 = vpack.c.bf16 %v233_v53, %v233_v53  ;;  %v296_v6 = vrot.slane %v281_v40, 7  ;;  %v402_v51 = vld [vmem:[%s921_s7 + $0x18] sm:$0xff]  ;;  %v357_v52 = vpop.permute.xlu1 %356 }
  0x89   :  { %v254_v0 = vpack.c.bf16 %v234_v55, %v234_v55  ;;  %v255_v1 = vpack.c.bf16 %v235_v56, %v235_v56  ;;  %v256_v2 = vpack.c.bf16 %v236_v57, %v236_v57  ;;  %v257_v5 = vpack.c.bf16 %v237_v58, %v237_v58  ;;  %v618_v57 = vld [vmem:[%s917_s3] ss:$0 sm:$0xff] }
  0x8a   :  { %v289_v4 = vunpack.c.l.b16 %v251_v61  ;;  %v290_v63 = vunpack.c.l.b16 %v252_v62  ;;  %v291_v10 = vunpack.c.l.b16 %v253_v59  ;;  %v288_v11 = vunpack.c.l.b16 %v250_v60 }
  0x8b   :  { %v292_v12 = vunpack.c.l.b16 %v254_v0  ;;  %v298_v13 = vsel %vm297_vm1, %v296_v6, %v280_v36  ;;  %v299_v14 = vrot.slane %v282_v43, 6  ;;  %v293_v15 = vunpack.c.l.b16 %v255_v1 }
  0x8c   :  { %v294_v17 = vunpack.c.l.b16 %v256_v2  ;;  %v302_v18 = vrot.slane %v283_v54, 5  ;;  %v317_v19 = vrot.slane %v289_v4, 7  ;;  %v295_v20 = vunpack.c.l.b16 %v257_v5  ;;  %v363_v2 = vpop.permute.xlu2 %362 }
  0x8d   :  { %v301_v21 = vsel %vm300_vm2, %v299_v14, %v298_v13  ;;  %v305_v22 = vrot.slane %v284_v3, 4  ;;  %v319_v23 = vrot.slane %v290_v63, 6  ;;  %v308_v25 = vrot.slane %v285_v7, 3 }
  0x8e   :  { %v304_v24 = vsel %vm303_vm3, %v302_v18, %v301_v21  ;;  %v318_v26 = vsel %vm297_vm1, %v317_v19, %v288_v11  ;;  %v321_v27 = vrot.slane %v291_v10, 5  ;;  %v311_v29 = vrot.slane %v286_v8, 2  ;;  %v495_v11 = vld [vmem:[%s924_s10 + $0x10] sm:$0xff]  ;;  %v619_v19 = vld [vmem:[%s919_s9] ss:$0 sm:$0xff] }
  0x8f   :  { %v307_v28 = vsel %vm306_vm4, %v305_v22, %v304_v24  ;;  %v320_v30 = vsel %vm300_vm2, %v319_v23, %v318_v26  ;;  %v323_v32 = vrot.slane %v292_v12, 4  ;;  %v325_v35 = vrot.slane %v293_v15, 3  ;;  %v496_v12 = vld [vmem:[%s924_s10 + $0x18] sm:$0xff]  ;;  %v620_v23 = vld [vmem:[%s922_s5] ss:$0 sm:$0xff] }
  0x90   :  { %v310_v33 = vsel %vm309_vm5, %v308_v25, %v307_v28  ;;  %v322_v34 = vsel %vm303_vm3, %v321_v27, %v320_v30  ;;  %v327_v38 = vrot.slane %v294_v17, 2  ;;  %v314_v39 = vrot.slane %v287_v9, 1  ;;  %v360_v58 = vpop.permute.xlu1 %359 }
  0x91   :  { %v313_v36 = vsel %vm312_vm6, %v311_v29, %v310_v33  ;;  %v324_v37 = vsel %vm306_vm4, %v323_v32, %v322_v34  ;;  %v329_v42 = vrot.slane %v295_v20, 1  ;;  %v406_v47 = vpack.c.bf16 %v403_v44, %v403_v44  ;;  %v621_v33 = vld [vmem:[%s923_s6] ss:$0 sm:$0xff]  ;;  %v494_v44 = vld [vmem:[%s924_s10 + $0x8] sm:$0xff] }
  0x92   :  { %v326_v40 = vsel %vm309_vm5, %v325_v35, %v324_v37  ;;  %v316_v31 = vsel %vm315_vm7, %v314_v39, %v313_v36  ;;  %v404_v49 = vpack.c.bf16 %v400_v46, %v399_v45  ;;  %v405_v53 = vpack.c.bf16 %v402_v51, %v401_v50  ;;  %v525_v46 = vld [vmem:[%s926_s12 + $0x10] sm:$0xff] }
  0x93   :  { %v328_v16 = vsel %vm312_vm6, %v327_v38, %v326_v40  ;;  %v420_v48 = vsel %vm418_vm8, %v406_v47, 0  ;;  %v349_v54 = vlaneseq  ;;  %v633_v59 = vmov 0.0   ;;  %v526_v47 = vld [vmem:[%s926_s12 + $0x18] sm:$0xff] }
  0x94   :  { %v330_v43 = vsel %vm315_vm7, %v329_v42, %v328_v16  ;;  %429 = vmatpush.bf16.msra.mxu1 %v420_v48  ;;  %v366_v5 = vpop.permute.xlu2 %365  ;;  %v499_v13 = vpack.c.bf16 %v496_v12, %v495_v11  ;;  %v529_v48 = vpack.c.bf16 %v526_v47, %v525_v46  ;;  %vm591_vm2 = vcmask 523264  }
  0x95   :  { %v331_v41 = vpack.c.b16 %v330_v43, %v316_v31  ;;  %v350_v56 = vand.u32 127, %v349_v54  ;;  %v372_v18 = vshrl.u32 %v349_v54, 7  ;;  %v523_v54 = vld [vmem:[%s926_s12] sm:$0xff] }
  0x96   :  { %513 = vmatpush.bf16.msrb.mxu0 %v499_v13 }
  0x97   :  { %598 = vmatmul.msk.bf16.vlgmr.msra.gmra.mxu0 %vm67_vm0, %v331_v41  ;;  %605 = vmatmul.msk.bf16.vlgmr.msra.gmra.mxu1 %vm411_vm9, %v404_v49  ;;  %vm367_vm10 = vcmp.eq.s32.totalorder %v350_v56, %v357_v52  ;;  %vm368_vm11 = vcmp.eq.s32.totalorder %v350_v56, %v360_v58  ;;  %vm369_vm13 = vcmp.eq.s32.totalorder %v350_v56, %v363_v2  ;;  %v373_v22 = vadd.s32 8, %v372_v18  ;;  %v493_v41 = vld [vmem:[%s924_s10] sm:$0xff]  ;;  %v556_v58 = vld [vmem:[%s928_s14 + $0x18] sm:$0xff] }
  0x98   :  { %v601_v0 = vsel %vm367_vm10, 1.0, %v633_v59  ;;  %v602_v1 = vsel %vm368_vm11, 1.0, %v633_v59  ;;  %vm370_vm14 = vcmp.eq.s32.totalorder %v350_v56, %v366_v5  ;;  %v603_v63 = vsel %vm369_vm13, 1.0, %v633_v59 }
  0x99   :  { %v396_v4 = vpack.c.bf16 %v602_v1, %v601_v0  ;;  %v604_v6 = vsel %vm370_vm14, 1.0, %v633_v59  ;;  %vm376_vm15 = vcmp.eq.s32.totalorder %v372_v18, %v620_v23  ;;  %vm377_vm1 = vcmp.eq.s32.totalorder %v373_v22, %v620_v23  ;;  %v622_v1 = vld [vmem:[%s925_s11] ss:$0 sm:$0xff] }
  0x9a   :  { %v397_v7 = vpack.c.bf16 %v604_v6, %v603_v63  ;;  %v599_v36 = vsel %vm376_vm15, 1.0, %v633_v59  ;;  %v600_v37 = vsel %vm377_vm1, 1.0, %v633_v59  ;;  %v498_v45 = vpack.c.bf16 %v494_v44, %v493_v41 }
  0x9b   :  { %v386_v40 = vmul.f32 %v621_v33, %v599_v36  ;;  %v387_v42 = vmul.f32 %v621_v33, %v600_v37 }
  0x9c   :  { %514 = vmatpush.bf16.msrb.mxu0 %v498_v45 }
  0x9d   :  { %v471_v43 = vpack.c.bf16 %v387_v42, %v386_v40 }
  0xa7   :  { %606 = vmatmul.msk.bf16.gmra.mxu1 %vm411_vm9, %v405_v53 }
 0x114   :  { %v344_v55 = vpop.f32.mrf.mxu0  ;;  %v431_v8 = vpop.f32.mrf.mxu1 }
 0x115   :  { %v843_v61 = vadd.f32 %v618_v57, %v344_v55  ;;  %v432_v24 = vadd.f32 %v619_v19, %v431_v8  ;;  %v524_v55 = vld [vmem:[%s926_s12 + $0x8] sm:$0xff]  ;;  %v623_v8 = vld [vmem:[%s927_s13] ss:$0 sm:$0xff] }
 0x116   :  { %v528_v56 = vpack.c.bf16 %v524_v55, %v523_v54 }
 0x11c   :  { %v346_v60 = vpop.f32.mrf.mxu0  ;;  %v433_v9 = vpop.f32.mrf.mxu1 }
 0x11d   :  { %v845_v62 = vadd.f32 %v618_v57, %v346_v60  ;;  %v434_v25 = vadd.f32 %v619_v19, %v433_v9  ;;  %v555_v57 = vld [vmem:[%s928_s14 + $0x10] sm:$0xff]  ;;  %v553_v60 = vld [vmem:[%s928_s14] sm:$0xff] }
 0x11f   :  { %v398_v3 = vpack.c.bf16 %v845_v62, %v843_v61 }
 0x121   :  { %455 = vmatpush.bf16.msra.mxu2 %v398_v3 }
 0x124   :  { %607 = vmatmul.msk.bf16.vlgmr.msra.gmra.mxu2 %vm441_vm12, %v396_v4  ;;  %v436_v15 = vpop.f32.mrf.mxu1 }
 0x125   :  { %v437_v20 = vadd.f32 %v619_v19, %v436_v15 }
 0x12c   :  { %v438_v21 = vpop.f32.mrf.mxu1 }
 0x12d   :  { %v439_v26 = vadd.f32 %v619_v19, %v438_v21 }
 0x134   :  { %608 = vmatmul.msk.bf16.gmra.mxu2 %vm441_vm12, %v397_v7 }
 0x1a7   :  { %v457_v10 = vpop.f32.mrf.mxu2 }
 0x1a8   :  { %v458_v32 = vadd.f32 %v457_v10, %v432_v24 }
 0x1aa   :  { %v467_v16 = vmax.f32 %v458_v32, 0.0 }
 0x1af   :  { %v459_v14 = vpop.f32.mrf.mxu2 }
 0x1b0   :  { %v460_v29 = vadd.f32 %v459_v14, %v434_v25 }
 0x1b2   :  { %v468_v38 = vmax.f32 %v460_v29, 0.0 }
 0x1b4   :  { %v472_v31 = vpack.c.bf16 %v468_v38, %v467_v16 }
 0x1b7   :  { %v462_v17 = vpop.f32.mrf.mxu2 }
 0x1b8   :  { %v463_v27 = vadd.f32 %v462_v17, %v437_v20 }
 0x1ba   :  { %v469_v34 = vmax.f32 %v463_v27, 0.0 }
 0x1bf   :  { %v464_v28 = vpop.f32.mrf.mxu2 }
 0x1c0   :  { %v465_v30 = vadd.f32 %v464_v28, %v439_v26 }
 0x1c2   :  { %v470_v35 = vmax.f32 %v465_v30, 0.0 }
 0x1c4   :  { %v473_v39 = vpack.c.bf16 %v470_v35, %v469_v34 }
 0x1c6   :  { %483 = vmatpush.bf16.msra.mxu3 %v473_v39 }
 0x1ca   :  { %484 = vmatpush.bf16.msra.mxu3 %v472_v31 }
 0x1cd   :  { %609 = vmatmul.msk.bf16.vlgmr.msra.gmra.mxu3 %vm67_vm0, %v471_v43 }
 0x1ce   :  { %543 = vmatpush.bf16.msrb.mxu3 %v529_v48 }
 0x1d2   :  { %544 = vmatpush.bf16.msrb.mxu3 %v528_v56 }
 0x250   :  { %v486_v49 = vpop.f32.mrf.mxu3 }
 0x251   :  { %v491_v51 = vadd.f32 %v486_v49, %v843_v61  ;;  %v559_v61 = vpack.c.bf16 %v556_v58, %v555_v57 }
 0x253   :  { %569 = vmatpush.bf16.msrb.mxu1 %v559_v61 }
 0x258   :  { %v488_v50 = vpop.f32.mrf.mxu3 }
 0x259   :  { %v492_v52 = vadd.f32 %v488_v50, %v845_v62  ;;  %v554_v62 = vld [vmem:[%s928_s14 + $0x8] sm:$0xff] }
 0x25a   :  { %v558_v59 = vpack.c.bf16 %v554_v62, %v553_v60 }
 0x25b   :  { %v497_v53 = vpack.c.bf16 %v492_v52, %v491_v51 }
 0x25c   :  { %570 = vmatpush.bf16.msrb.mxu1 %v558_v59 }
 0x25d   :  { %610 = vmatmul.msk.bf16.vlgmr.msrb.gmra.mxu0 %vm67_vm0, %v497_v53 }
 0x2da   :  { %v516_v0 = vpop.f32.mrf.mxu0 }
 0x2db   :  { %v517_v2 = vadd.f32 %v622_v1, %v516_v0 }
 0x2dd   :  { %v521_v5 = vmax.f32 %v517_v2, 0.0 }
 0x2e2   :  { %v518_v3 = vpop.f32.mrf.mxu0 }
 0x2e3   :  { %v519_v4 = vadd.f32 %v622_v1, %v518_v3 }
 0x2e5   :  { %v522_v63 = vmax.f32 %v519_v4, 0.0 }
 0x2e7   :  { %v527_v6 = vpack.c.bf16 %v522_v63, %v521_v5 }
 0x2e9   :  { %611 = vmatmul.msk.bf16.vlgmr.msrb.gmra.mxu3 %vm67_vm0, %v527_v6 }
 0x36c   :  { %v546_v7 = vpop.f32.mrf.mxu3 }
 0x36d   :  { %v547_v9 = vadd.f32 %v623_v8, %v546_v7 }
 0x36f   :  { %v551_v12 = vmax.f32 %v547_v9, 0.0 }
 0x374   :  { %v548_v10 = vpop.f32.mrf.mxu3 }
 0x375   :  { %v549_v11 = vadd.f32 %v623_v8, %v548_v10 }
 0x377   :  { %v552_v13 = vmax.f32 %v549_v11, 0.0 }
 0x379   :  { %v557_v14 = vpack.c.bf16 %v552_v13, %v551_v12 }
 0x37b   :  { %612 = vmatmul.msk.bf16.vlgmr.msrb.gmra.mxu1 %vm67_vm0, %v557_v14 }
 0x3f8   :  { %v572_v15 = vpop.f32.mrf.mxu1 }
 0x3f9   :  { %628 = vtanh.f32 %v572_v15 }
 0x3ff   :  { %v629_v17 = vpop.eup %628 }
 0x400   :  { %581 = vperm.xlu0 %615, %v629_v17   ;;  %v574_v18 = vpop.f32.mrf.mxu1 }
 0x401   :  { %630 = vtanh.f32 %v574_v18 }
 0x407   :  { %v631_v19 = vpop.eup %630 }
 0x408   :  { %586 = vperm.xlu1 %616, %v631_v19  }
 0x472   :  { %v582_v20 = vpop.permute.xlu0 %581 }
 0x473   :  { %v589_v21 = vsel %vm67_vm0, %v551_v12, %v582_v20 }
 0x474   :  { %592 = vst.msk [vmem:[%s929_s15] sm:$0xff] %vm591_vm2, %v589_v21 }
 0x47a   :  { %v587_v22 = vpop.permute.xlu1 %586 }
 0x47b   :  { %v590_v23 = vsel %vm67_vm0, %v552_v13, %v587_v22 }
 0x47c   :  { %593 = vst.msk [vmem:[%s929_s15 + $0x8] sm:$0xff] %vm591_vm2, %v590_v23 }

// kernel: gine_conv_encoder_forward.4
= control target key start
LH: loop header
LB: loop body
LE: loop exit
PB: predicated region body
PF: predicated region fallthrough
CT: control target
= control target key end

     0   :  { %v427_v3 = vmov 0   ;;  %vm71_vm0 = vcmask 261120   ;;  %v88_v19 = vlaneseq  ;;  %vm226_vm1 = vcmask 1041408   ;;  %s654_s2 = inlined_call_operand.vmem [shape: f32[32,1], index: 2, kind: input, shape index: {}]   ;;  %s655_s5 = inlined_call_operand.vmem [shape: s32[32,1], index: 5, kind: input, shape index: {}]   ;;  %s656_s1 = inlined_call_operand.vmem [shape: s32[8,1], index: 1, kind: input, shape index: {}]   ;;  %s657_s3 = inlined_call_operand.<no memory space> [shape: f32[1,1], index: 3, kind: input, shape index: {}]   ;;  %s658_s0 = inlined_call_operand.vmem [shape: f32[8,32], index: 0, kind: input, shape index: {}]   ;;  %s659_s10 = inlined_call_operand.vmem [shape: f32[1,32], index: 10, kind: input, shape index: {}]   ;;  %s660_s9 = inlined_call_operand.vmem [shape: f32[4,32], index: 9, kind: input, shape index: {}]   ;;  %s661_s8 = inlined_call_operand.vmem [shape: f32[32,4], index: 8, kind: input, shape index: {}]   ;;  %s662_s6 = inlined_call_operand.vmem [shape: s32[1,32], index: 6, kind: input, shape index: {}]   ;;  %s663_s7 = inlined_call_operand.vmem [shape: f32[1,32], index: 7, kind: input, shape index: {}]   ;;  %s664_s12 = inlined_call_operand.vmem [shape: f32[1,32], index: 12, kind: input, shape index: {}]   ;;  %s665_s11 = inlined_call_operand.vmem [shape: f32[32,32], index: 11, kind: input, shape index: {}]   ;;  %s666_s13 = inlined_call_operand.vmem [shape: f32[32,32], index: 13, kind: input, shape index: {}]   ;;  %s667_s4 = inlined_call_operand.vmem [shape: f32[8,32], index: 4, kind: input, shape index: {}]   ;;  %s668_s16 = inlined_call_operand.vmem [shape: f32[8,32], index: 16, kind: output, shape index: {0}]   ;;  %s669_s14 = inlined_call_operand.vmem [shape: f32[1,32], index: 14, kind: input, shape index: {}]   ;;  %s670_s15 = inlined_call_operand.vmem [shape: f32[32,1], index: 15, kind: input, shape index: {}]   ;;  %s671_s17 = inlined_call_operand.vmem [shape: f32[8,64], index: 17, kind: output, shape index: {1}]  }
   0x1   :  { %674 = sst [smem:[#allocation3_spill]] %s654_s2  ;;  %414 = vset.pattern.permute.xlu2 %v427_v3  ;;  %412 = vset.pattern.permute.xlu0 %v427_v3  ;;  %v23_v4 = vstv %s657_s3  ;;  %v90_v8 = vld [vmem:[%s656_s1] sm:$0xff]  ;;  %vm147_vm2 = vcmask 1043456   ;;  %v208_v23 = vld [vmem:[%s661_s8 + $0x8] sm:$0xff]  ;;  %vm219_vm3 = vcmask 31744   ;;  %v428_v30 = vmov 0.0  }
   0x2   :  { %675 = sst [smem:[#allocation4_spill]] %s655_s5  ;;  %24 = vst [vmem:[#allocation2] sm:$0x1] %v23_v4  ;;  %413 = vset.pattern.permute.xlu1 %v427_v3  ;;  %v543_v10 = vld [vmem:[%s658_s0] sm:$0xff]  ;;  %92 = vperm.xlu2 %414, %v90_v8   ;;  %v89_v26 = vand.u32 127, %v88_v19  ;;  %vm104_vm7 = vcmask 64512  }
   0x3   :  { %s676_s26 = sld [smem:[#allocation3_spill]]  ;;  %v64_v11 = vpack.c.bf16 %v543_v10, %v543_v10  ;;  %v211_v21 = vld [vmem:[%s660_s9] sm:$0xf]  ;;  %v209_v41 = vld [vmem:[%s661_s8 + $0x10] sm:$0xff]  ;;  %v210_v42 = vld [vmem:[%s661_s8 + $0x18] sm:$0xff]  ;;  %vm384_vm13 = vcmask 523264  }
   0x4   :  { %s677_s22 = sld [smem:[#allocation4_spill]]  ;;  %v207_v22 = vld [vmem:[%s661_s8] sm:$0xff]  ;;  %v214_v24 = vpack.c.bf16 %v211_v21, %v211_v21  ;;  %v213_v45 = vpack.c.bf16 %v210_v42, %v209_v41  ;;  %v328_v41 = vld [vmem:[%s666_s13 + $0x10] sm:$0xff]  ;;  %v329_v42 = vld [vmem:[%s666_s13 + $0x18] sm:$0xff] }
   0x5   :  { %v148_v25 = vsel %vm147_vm2, %v64_v11, 0  ;;  %v212_v29 = vpack.c.bf16 %v208_v23, %v207_v22 }
   0x6   :  { %262 = vmatpush.bf16.msra.mxu3 %v148_v25  ;;  %157 = vmatpush.bf16.msra.mxu1 %v148_v25  ;;  %v228_v28 = vsel %vm226_vm1, %v214_v24, 0 }
   0x7   :  { %237 = vmatpush.bf16.msra.mxu2 %v228_v28 }
   0x9   :  { %v62_v0 = vld [vmem:[%s676_s26 + $0x10] sm:$0xff]  ;;  %v63_v1 = vld [vmem:[%s676_s26 + $0x18] sm:$0xff]  ;;  %v60_v2 = vld [vmem:[%s676_s26] sm:$0xff] }
   0xa   :  { %v66_v5 = vpack.c.bf16 %v63_v1, %v62_v0  ;;  %v61_v6 = vld [vmem:[%s676_s26 + $0x8] sm:$0xff]  ;;  %v165_v7 = vld [vmem:[%s677_s22] sm:$0xff]  ;;  %v167_v13 = vld [vmem:[%s677_s22 + $0x10] sm:$0xff]  ;;  %402 = vmatmul.msk.bf16.vlgmr.msra.gmra.mxu2 %vm219_vm3, %v212_v29  ;;  %v186_v29 = vshrl.u32 %v88_v19, 7 }
   0xb   :  { %170 = vperm.xlu0 %412, %v165_v7   ;;  %v65_v9 = vpack.c.bf16 %v61_v6, %v60_v2  ;;  %v166_v12 = vld [vmem:[%s677_s22 + $0x8] sm:$0xff]  ;;  %176 = vperm.xlu1 %413, %v167_v13   ;;  %v168_v14 = vld [vmem:[%s677_s22 + $0x18] sm:$0xff]  ;;  %v415_v15 = vld [vmem:[#allocation2] ss:$0 sm:$0xff] }
   0xc   :  { %81 = vmatpush.bf16.msra.mxu0 %v66_v5  ;;  %v300_v19 = vld [vmem:[%s665_s11 + $0x10] sm:$0xff] }
  0x10   :  { %82 = vmatpush.bf16.msra.mxu0 %v65_v9  ;;  %v416_v9 = vld [vmem:[%s659_s10] ss:$0 sm:$0xff] }
  0x13   :  { %394 = vmatmul.msk.bf16.vlgmr.msra.gmra.mxu0 %vm71_vm0, %v64_v11  ;;  %173 = vperm.xlu0 %412, %v166_v12  }
  0x14   :  { %179 = vperm.xlu1 %413, %v168_v14  }
  0x1a   :  { %403 = vmatmul.msk.bf16.gmra.mxu2 %vm219_vm3, %v213_v45  ;;  %v327_v45 = vld [vmem:[%s666_s13 + $0x8] sm:$0xff] }
  0x5c   :  { %v93_v27 = vpop.permute.xlu2 %92 }
  0x5d   :  { %vm94_vm5 = vcmp.eq.s32.totalorder %v89_v26, %v93_v27 }
  0x5e   :  { %v395_v33 = vsel %vm94_vm5, 1.0, %v428_v30 }
  0x5f   :  { %vm102_vm8 = vcmp.gt.f32.partialorder %v395_v33, 0.0 }
  0x7d   :  { %v171_v20 = vpop.permute.xlu0 %170  ;;  %v177_v36 = vpop.permute.xlu1 %176 }
  0x7e   :  { %vm181_vm4 = vcmp.eq.s32.totalorder %v89_v26, %v171_v20  ;;  %vm183_vm9 = vcmp.eq.s32.totalorder %v89_v26, %v177_v36 }
  0x7f   :  { %v398_v31 = vsel %vm181_vm4, 1.0, %v428_v30  ;;  %v400_v48 = vsel %vm183_vm9, 1.0, %v428_v30 }
  0x85   :  { %v174_v32 = vpop.permute.xlu0 %173 }
  0x86   :  { %vm182_vm6 = vcmp.eq.s32.totalorder %v89_v26, %v174_v32  ;;  %v180_v44 = vpop.permute.xlu1 %179 }
  0x87   :  { %v399_v34 = vsel %vm182_vm6, 1.0, %v428_v30  ;;  %vm184_vm10 = vcmp.eq.s32.totalorder %v89_v26, %v180_v44  ;;  %v332_v44 = vpack.c.bf16 %v329_v42, %v328_v41 }
  0x88   :  { %v205_v35 = vpack.c.bf16 %v399_v34, %v398_v31  ;;  %v401_v49 = vsel %vm184_vm10, 1.0, %v428_v30  ;;  %v417_v31 = vld [vmem:[%s662_s6] ss:$0 sm:$0xff] }
  0x89   :  { %v206_v51 = vpack.c.bf16 %v401_v49, %v400_v48  ;;  %vm189_vm12 = vcmp.eq.s32.totalorder %v186_v29, %v417_v31 }
  0x8a   :  { %404 = vmatmul.msk.bf16.vlgmr.msra.gmra.mxu3 %vm104_vm7, %v205_v35  ;;  %v397_v34 = vsel %vm189_vm12, 1.0, %v428_v30  ;;  %v299_v30 = vld [vmem:[%s665_s11 + $0x8] sm:$0xff] }
  0x8d   :  { %v239_v4 = vpop.f32.mrf.mxu2 }
  0x8e   :  { %v240_v14 = vadd.f32 %v416_v9, %v239_v4 }
  0x90   :  { %v84_v16 = vpop.f32.mrf.mxu0 }
  0x91   :  { %v85_v17 = vadd.f32 %v415_v15, %v84_v16 }
  0x93   :  { %99 = vperm.xlu2 %414, %v85_v17  }
  0x95   :  { %v241_v6 = vpop.f32.mrf.mxu2 }
  0x96   :  { %v242_v15 = vadd.f32 %v416_v9, %v241_v6 }
  0x98   :  { %v86_v18 = vpop.f32.mrf.mxu0 }
  0x9a   :  { %405 = vmatmul.msk.bf16.gmra.mxu3 %vm104_vm7, %v206_v51 }
  0x9d   :  { %v244_v8 = vpop.f32.mrf.mxu2 }
  0x9e   :  { %v245_v12 = vadd.f32 %v416_v9, %v244_v8 }
  0xa5   :  { %v246_v13 = vpop.f32.mrf.mxu2 }
  0xa6   :  { %v247_v17 = vadd.f32 %v416_v9, %v246_v13 }
  0xed   :  { %v100_v37 = vpop.permute.xlu2 %99 }
  0xee   :  { %v103_v38 = vsel %vm102_vm8, %v100_v37, -1e+30  ;;  %v301_v37 = vld [vmem:[%s665_s11 + $0x18] sm:$0xff] }
  0xef   :  { %v105_v39 = vsel %vm104_vm7, %v103_v38, -inf }
  0xf0   :  { %v106_v40 = vrot.slane %v105_v39, 4 }
  0xf2   :  { %v107_v43 = vmax.f32 %v105_v39, %v106_v40  ;;  %v298_v39 = vld [vmem:[%s665_s11] sm:$0xff] }
  0xf3   :  { %v303_v40 = vpack.c.bf16 %v299_v30, %v298_v39 }
  0xf4   :  { %v108_v46 = vrot.slane %v107_v43, 2 }
  0xf6   :  { %v109_v47 = vmax.f32 %v107_v43, %v108_v46  ;;  %v326_v43 = vld [vmem:[%s666_s13] sm:$0xff] }
  0xf7   :  { %v331_v46 = vpack.c.bf16 %v327_v45, %v326_v43 }
  0xf8   :  { %v110_v50 = vrot.slane %v109_v47, 1 }
  0xfa   :  { %v111_v52 = vmax.f32 %v109_v47, %v110_v50  ;;  %v59_v47 = vld [vmem:[%s667_s4] sm:$0xff] }
  0xfc   :  { %v112_v53 = vsub.f32 %v103_v38, %v111_v52  ;;  %v304_v38 = vpack.c.bf16 %v301_v37, %v300_v19 }
  0xfe   :  { %v113_v54 = vmul.f32 1.442695, %v112_v53  ;;  %318 = vmatpush.bf16.msrb.mxu0 %v304_v38 }
 0x100   :  { %421 = vpow2.f32 %v113_v54 }
 0x102   :  { %319 = vmatpush.bf16.msrb.mxu0 %v303_v40 }
 0x106   :  { %v422_v55 = vpop.eup %421 }
 0x107   :  { %v115_v56 = vmul.f32 %v422_v55, %v395_v33  ;;  %v418_v33 = vld [vmem:[%s663_s7] ss:$0 sm:$0xff]  ;;  %v356_v55 = vld [vmem:[%s670_s15 + $0x10] sm:$0xff] }
 0x108   :  { %v196_v35 = vmul.f32 %v418_v33, %v397_v34 }
 0x109   :  { %v116_v57 = vsel %vm104_vm7, %v115_v56, 0.0 }
 0x10a   :  { %v117_v58 = vrot.slane %v116_v57, 4  ;;  %v278_v36 = vpack.c.bf16 %v196_v35, %v196_v35 }
 0x10c   :  { %v118_v59 = vadd.f32 %v117_v58, %v116_v57  ;;  %v354_v57 = vld [vmem:[%s670_s15] sm:$0xff] }
 0x10d   :  { %v264_v5 = vpop.f32.mrf.mxu3 }
 0x10e   :  { %v119_v60 = vrot.slane %v118_v59, 2  ;;  %v265_v18 = vadd.f32 %v264_v5, %v240_v14 }
 0x110   :  { %v120_v61 = vadd.f32 %v119_v60, %v118_v59  ;;  %v274_v24 = vmax.f32 %v265_v18, 0.0  ;;  %v419_v60 = vld [vmem:[%s664_s12] ss:$0 sm:$0xff] }
 0x112   :  { %v121_v62 = vrot.slane %v120_v61, 1 }
 0x114   :  { %v122_v63 = vadd.f32 %v121_v62, %v120_v61 }
 0x115   :  { %v266_v7 = vpop.f32.mrf.mxu3 }
 0x116   :  { %vm123_vm11 = vcmp.gt.f32.partialorder %v122_v63, 0.0  ;;  %v267_v20 = vadd.f32 %v266_v7, %v242_v15 }
 0x117   :  { %v124_v0 = vsel %vm123_vm11, %v122_v63, 1.0 }
 0x118   :  { %423 = vrcp.f32 %v124_v0  ;;  %v275_v25 = vmax.f32 %v267_v20, 0.0 }
 0x11a   :  { %v279_v28 = vpack.c.bf16 %v275_v25, %v274_v24 }
 0x11d   :  { %v269_v11 = vpop.f32.mrf.mxu3 }
 0x11e   :  { %v424_v1 = vpop.eup %423  ;;  %v270_v16 = vadd.f32 %v269_v11, %v245_v12 }
 0x11f   :  { %v126_v2 = vmul.f32 %v424_v1, %v115_v56  ;;  %v357_v56 = vld [vmem:[%s670_s15 + $0x18] sm:$0xff] }
 0x120   :  { %v276_v22 = vmax.f32 %v270_v16, 0.0  ;;  %v360_v58 = vpack.c.bf16 %v357_v56, %v356_v55 }
 0x121   :  { %v127_v3 = vpack.c.bf16 %v126_v2, %v126_v2  ;;  %v420_v2 = vld [vmem:[%s669_s14] ss:$0 sm:$0xff] }
 0x122   :  { %370 = vmatpush.bf16.msrb.mxu2 %v360_v58 }
 0x123   :  { %128 = vxpose.xlu0.c.b16.start.end [1/1] (short) (narrow) %v127_v3, 16 }
 0x125   :  { %v271_v21 = vpop.f32.mrf.mxu3 }
 0x126   :  { %v272_v23 = vadd.f32 %v271_v21, %v247_v17 }
 0x128   :  { %v277_v26 = vmax.f32 %v272_v23, 0.0 }
 0x12a   :  { %v280_v27 = vpack.c.bf16 %v277_v26, %v276_v22 }
 0x12c   :  { %290 = vmatpush.bf16.msrb.mxu1 %v280_v27 }
 0x130   :  { %291 = vmatpush.bf16.msrb.mxu1 %v279_v28 }
 0x1cf   :  { %v136_v32 = vpop.trf.xlu0 }
 0x1d0   :  { %396 = vmatmul.msk.bf16.vlgmr.msra.gmra.mxu1 %vm104_vm7, %v136_v32 }
 0x1d1   :  { %346 = vmatpush.bf16.msra.mxu1 %v332_v44 }
 0x1d5   :  { %347 = vmatpush.bf16.msra.mxu1 %v331_v46 }
 0x1e0   :  { %406 = vmatmul.msk.bf16.vlgmr.msrb.gmra.mxu1 %vm71_vm0, %v278_v36 }
 0x24d   :  { %v159_v48 = vpop.f32.mrf.mxu1 }
 0x24e   :  { %v163_v49 = vadd.f32 %v159_v48, %v59_v47 }
 0x250   :  { %164 = vst.msk [vmem:[%s668_s16] sm:$0xff] %vm71_vm0, %v163_v49 }
 0x255   :  { %v161_v50 = vpop.f32.mrf.mxu1 }
 0x25d   :  { %v293_v51 = vpop.f32.mrf.mxu1 }
 0x25e   :  { %v297_v52 = vadd.f32 %v293_v51, %v543_v10  ;;  %v355_v10 = vld [vmem:[%s670_s15 + $0x8] sm:$0xff] }
 0x25f   :  { %v359_v59 = vpack.c.bf16 %v355_v10, %v354_v57 }
 0x260   :  { %v302_v53 = vpack.c.bf16 %v297_v52, %v297_v52 }
 0x261   :  { %371 = vmatpush.bf16.msrb.mxu2 %v359_v59 }
 0x262   :  { %407 = vmatmul.msk.bf16.vlgmr.msrb.gmra.mxu0 %vm71_vm0, %v302_v53 }
 0x265   :  { %v295_v54 = vpop.f32.mrf.mxu1 }
 0x2df   :  { %v321_v61 = vpop.f32.mrf.mxu0 }
 0x2e0   :  { %v322_v62 = vadd.f32 %v419_v60, %v321_v61 }
 0x2e2   :  { %v325_v63 = vmax.f32 %v322_v62, 0.0 }
 0x2e4   :  { %v330_v0 = vpack.c.bf16 %v325_v63, %v325_v63 }
 0x2e6   :  { %408 = vmatmul.msk.bf16.vlgmr.msra.gmra.mxu1 %vm71_vm0, %v330_v0 }
 0x2e7   :  { %v323_v1 = vpop.f32.mrf.mxu0 }
 0x363   :  { %v349_v3 = vpop.f32.mrf.mxu1 }
 0x364   :  { %v350_v4 = vadd.f32 %v420_v2, %v349_v3 }
 0x366   :  { %v353_v5 = vmax.f32 %v350_v4, 0.0 }
 0x368   :  { %v358_v6 = vpack.c.bf16 %v353_v5, %v353_v5 }
 0x36a   :  { %409 = vmatmul.msk.bf16.vlgmr.msrb.gmra.mxu2 %vm71_vm0, %v358_v6 }
 0x36b   :  { %v351_v7 = vpop.f32.mrf.mxu1 }
 0x3ed   :  { %v373_v8 = vpop.f32.mrf.mxu2 }
 0x3ee   :  { %425 = vtanh.f32 %v373_v8 }
 0x3f4   :  { %v426_v9 = vpop.eup %425 }
 0x3f5   :  { %380 = vperm.xlu1 %413, %v426_v9   ;;  %v375_v11 = vpop.f32.mrf.mxu2 }
 0x467   :  { %v381_v12 = vpop.permute.xlu1 %380 }
 0x468   :  { %v383_v13 = vsel %vm71_vm0, %v353_v5, %v381_v12 }
 0x469   :  { %385 = vst.msk [vmem:[%s671_s17] sm:$0xff] %vm384_vm13, %v383_v13 }

// kernel: gine_conv_encoder_forward.5
= control target key start
LH: loop header
LB: loop body
LE: loop exit
PB: predicated region body
PF: predicated region fallthrough
CT: control target
= control target key end

     0   :  { %v146_v3 = vmov 0   ;;  %vm36_vm0 = vcmask 261120   ;;  %v53_v15 = vlaneseq  ;;  %v147_v18 = vmov 0.0   ;;  %s209_s2 = inlined_call_operand.vmem [shape: f32[32,1], index: 2, kind: input, shape index: {}]   ;;  %s210_s1 = inlined_call_operand.vmem [shape: s32[4,1], index: 1, kind: input, shape index: {}]   ;;  %s211_s3 = inlined_call_operand.<no memory space> [shape: f32[1,1], index: 3, kind: input, shape index: {}]   ;;  %s212_s0 = inlined_call_operand.vmem [shape: f32[4,32], index: 0, kind: input, shape index: {}]   ;;  %s213_s4 = inlined_call_operand.vmem [shape: f32[8,32], index: 4, kind: input, shape index: {}]   ;;  %s214_s5 = inlined_call_operand.vmem [shape: f32[8,32], index: 5, kind: output, shape index: {}]  }
   0x1   :  { %v27_v0 = vld [vmem:[%s209_s2 + $0x10] sm:$0xff]  ;;  %v28_v1 = vld [vmem:[%s209_s2 + $0x18] sm:$0xff]  ;;  %v25_v2 = vld [vmem:[%s209_s2] sm:$0xff]  ;;  %140 = vset.pattern.permute.xlu0 %v146_v3  ;;  %v10_v4 = vstv %s211_s3  ;;  %vm69_vm2 = vcmask 60416   ;;  %vm113_vm4 = vcmask 1041408   ;;  %vm109_vm6 = vcmask 31744  }
   0x2   :  { %v31_v5 = vpack.c.bf16 %v28_v1, %v27_v0  ;;  %v26_v6 = vld [vmem:[%s209_s2 + $0x8] sm:$0xff]  ;;  %v55_v7 = vld [vmem:[%s210_s1] sm:$0xf]  ;;  %11 = vst [vmem:[#allocation2] sm:$0x1] %v10_v4  ;;  %v54_v16 = vand.u32 127, %v53_v15 }
   0x3   :  { %57 = vperm.xlu0 %140, %v55_v7   ;;  %v30_v8 = vpack.c.bf16 %v26_v6, %v25_v2  ;;  %v24_v9 = vld [vmem:[%s212_s0] sm:$0xf] }
   0x4   :  { %46 = vmatpush.bf16.msra.mxu0 %v31_v5  ;;  %v29_v10 = vpack.c.bf16 %v24_v9, %v24_v9  ;;  %v23_v46 = vld [vmem:[%s213_s4] sm:$0xff] }
   0x6   :  { %v114_v31 = vsel %vm113_vm4, %v29_v10, 0 }
   0x7   :  { %123 = vmatpush.bf16.msra.mxu1 %v114_v31 }
   0x8   :  { %47 = vmatpush.bf16.msra.mxu0 %v30_v8 }
   0x9   :  { %v141_v11 = vld [vmem:[#allocation2] ss:$0 sm:$0xff] }
   0xb   :  { %135 = vmatmul.msk.bf16.vlgmr.msra.gmra.mxu0 %vm36_vm0, %v29_v10 }
  0x75   :  { %v58_v17 = vpop.permute.xlu0 %57 }
  0x76   :  { %vm59_vm1 = vcmp.eq.s32.totalorder %v54_v16, %v58_v17 }
  0x77   :  { %v136_v19 = vsel %vm59_vm1, 1.0, %v147_v18 }
  0x78   :  { %vm67_vm3 = vcmp.gt.f32.partialorder %v136_v19, 0.0 }
  0x88   :  { %v49_v12 = vpop.f32.mrf.mxu0 }
  0x89   :  { %v50_v13 = vadd.f32 %v141_v11, %v49_v12 }
  0x8b   :  { %64 = vperm.xlu0 %140, %v50_v13  }
  0x90   :  { %v51_v14 = vpop.f32.mrf.mxu0 }
  0xfd   :  { %v65_v20 = vpop.permute.xlu0 %64 }
  0xfe   :  { %v68_v21 = vsel %vm67_vm3, %v65_v20, -1e+30 }
  0xff   :  { %v70_v22 = vsel %vm69_vm2, %v68_v21, -inf }
 0x100   :  { %v71_v23 = vrot.slane %v70_v22, 4 }
 0x102   :  { %v72_v24 = vmax.f32 %v70_v22, %v71_v23 }
 0x104   :  { %v73_v25 = vrot.slane %v72_v24, 2 }
 0x106   :  { %v74_v26 = vmax.f32 %v72_v24, %v73_v25 }
 0x108   :  { %v75_v27 = vrot.slane %v74_v26, 1 }
 0x10a   :  { %v76_v28 = vmax.f32 %v74_v26, %v75_v27 }
 0x10c   :  { %v77_v29 = vsub.f32 %v68_v21, %v76_v28 }
 0x10e   :  { %v78_v30 = vmul.f32 1.442695, %v77_v29 }
 0x110   :  { %142 = vpow2.f32 %v78_v30 }
 0x116   :  { %v143_v32 = vpop.eup %142 }
 0x117   :  { %v80_v33 = vmul.f32 %v143_v32, %v136_v19 }
 0x119   :  { %v81_v34 = vsel %vm69_vm2, %v80_v33, 0.0 }
 0x11a   :  { %v82_v35 = vrot.slane %v81_v34, 4 }
 0x11c   :  { %v83_v36 = vadd.f32 %v82_v35, %v81_v34 }
 0x11e   :  { %v84_v37 = vrot.slane %v83_v36, 2 }
 0x120   :  { %v85_v38 = vadd.f32 %v84_v37, %v83_v36 }
 0x122   :  { %v86_v39 = vrot.slane %v85_v38, 1 }
 0x124   :  { %v87_v40 = vadd.f32 %v86_v39, %v85_v38 }
 0x126   :  { %vm88_vm5 = vcmp.gt.f32.partialorder %v87_v40, 0.0 }
 0x127   :  { %v89_v41 = vsel %vm88_vm5, %v87_v40, 1.0 }
 0x128   :  { %144 = vrcp.f32 %v89_v41 }
 0x12e   :  { %v145_v42 = vpop.eup %144 }
 0x12f   :  { %v91_v43 = vmul.f32 %v145_v42, %v80_v33 }
 0x131   :  { %v92_v44 = vpack.c.bf16 %v91_v43, %v91_v43 }
 0x133   :  { %93 = vxpose.xlu1.c.b16.start.end [1/1] (short) (narrow) %v92_v44, 16 }
 0x1df   :  { %v101_v45 = vpop.trf.xlu1 }
 0x1e0   :  { %137 = vmatmul.msk.bf16.vlgmr.msra.gmra.mxu1 %vm109_vm6, %v101_v45 }
 0x25d   :  { %v125_v47 = vpop.f32.mrf.mxu1 }
 0x25e   :  { %v129_v48 = vadd.f32 %v125_v47, %v23_v46 }
 0x260   :  { %130 = vst.msk [vmem:[%s214_s5] sm:$0xff] %vm36_vm0, %v129_v48 }
 0x265   :  { %v127_v49 = vpop.f32.mrf.mxu1 }

</bundles_post_ra>
